<compile_context>
chip_gen: v5e
topology: v5e:2x2
jax: 0.10.0
libtpu: 0.0.40
codegen_flags: <defaults>
</compile_context>

<pallas_src>
import functools

import numpy as np

import jax
import jax.numpy as jnp
from jax.experimental import pallas as pl
from jax.experimental.pallas import tpu as pltpu


def _round_up(x, m):
    return ((x + m - 1) // m) * m


# ---------------------------------------------------------------------------
# Kernel 1: feature transform  XW = x @ W   (row-tiled, bf16 lane-dense output)
# ---------------------------------------------------------------------------
def xw_kernel(x_ref, w_ref, o_ref):
    # x may be f32 (first layer) or bf16 (subsequent layers); W stays f32.
    o_ref[...] = jnp.dot(
        x_ref[...].astype(jnp.float32), w_ref[...],
        preferred_element_type=jnp.float32
    ).astype(o_ref.dtype)


def feature_transform(x, w, *, tm):
    n, f = x.shape
    hp = w.shape[1]
    return pl.pallas_call(
        xw_kernel,
        out_shape=jax.ShapeDtypeStruct((n, hp), jnp.bfloat16),
        grid=(n // tm,),
        in_specs=[
            pl.BlockSpec((tm, f), lambda i: (i, 0)),
            pl.BlockSpec((f, hp), lambda i: (0, 0)),
        ],
        out_specs=pl.BlockSpec((tm, hp), lambda i: (i, 0)),
        compiler_params=pltpu.CompilerParams(
            dimension_semantics=("parallel",)),
    )(x, w)


# ---------------------------------------------------------------------------
# Kernel 2: block-sparse tiled aggregation  adj @ XW  + bias -> LayerNorm -> ReLU
#           grid = (row tiles, max nonzero col-tiles), tile-CSR in SMEM,
#           f32 VMEM accumulator, fused epilogue, bf16 output.
# ---------------------------------------------------------------------------
def gcn_agg_kernel(counts_ref, kidx_ref, adj_ref, xw_ref, b_ref, gamma_ref,
                   beta_ref, o_ref, acc_ref, *, h_true):
    i = pl.program_id(0)
    k = pl.program_id(1)

    @pl.when(k == 0)
    def _():
        acc_ref[...] = jnp.zeros_like(acc_ref)

    @pl.when(k < counts_ref[i])          # skip zero adjacency tiles
    def _():
        # bf16 x bf16 MXU matmul, f32 accumulation (no casts on critical path).
        acc_ref[...] += jnp.dot(adj_ref[...], xw_ref[...],
                                preferred_element_type=jnp.float32)

    @pl.when(k == pl.num_programs(1) - 1)
    def _():
        h = acc_ref[...] + b_ref[...]          # padded lanes stay exactly 0
        inv_h = 1.0 / float(h_true)
        # LayerNorm over the true hidden width only (biased var, eps=1e-5).
        mean = jnp.sum(h, axis=-1, keepdims=True) * inv_h
        diff = h - mean
        lane = jax.lax.broadcasted_iota(jnp.int32, h.shape, 1)
        mask = lane < h_true
        var = jnp.sum(jnp.where(mask, diff * diff, 0.0),
                      axis=-1, keepdims=True) * inv_h
        hn = diff * jax.lax.rsqrt(var + 1e-5)
        hn = hn * gamma_ref[...] + beta_ref[...]   # gamma/beta zero in padding
        o_ref[...] = jnp.maximum(hn, 0.0).astype(o_ref.dtype)


def gcn_layer(adj_bf16, xw, b, gamma, beta, counts, kidx, *,
              h_true, tm, tk, n_k_steps):
    n = adj_bf16.shape[0]
    hp = xw.shape[1]
    n_i = n // tm
    kernel = functools.partial(gcn_agg_kernel, h_true=h_true)
    cost = pl.CostEstimate(
        flops=int(2 * n_i * n_k_steps * tm * tk * hp),
        transcendentals=int(n),
        bytes_accessed=int(
            n_i * n_k_steps * (tm * tk + tk * hp) * 2   # adj tiles + XW re-fetch (bf16)
            + n * hp * 2                                # bf16 output writeback
            + 3 * hp * 4),
    )
    grid_spec = pltpu.PrefetchScalarGridSpec(
        num_scalar_prefetch=2,                    # counts, kidx -> SMEM
        grid=(n_i, n_k_steps),
        in_specs=[
            pl.BlockSpec((tm, tk), lambda i, k, cnt, kid: (i, kid[i, k])),  # adj
            pl.BlockSpec((tk, hp), lambda i, k, cnt, kid: (kid[i, k], 0)),  # XW
            pl.BlockSpec((1, hp), lambda i, k, cnt, kid: (0, 0)),           # bias
            pl.BlockSpec((1, hp), lambda i, k, cnt, kid: (0, 0)),           # gamma
            pl.BlockSpec((1, hp), lambda i, k, cnt, kid: (0, 0)),           # beta
        ],
        out_specs=pl.BlockSpec((tm, hp), lambda i, k, cnt, kid: (i, 0)),
        scratch_shapes=[pltpu.VMEM((tm, hp), jnp.float32)],
    )
    return pl.pallas_call(
        kernel,
        out_shape=jax.ShapeDtypeStruct((n, hp), jnp.bfloat16),
        grid_spec=grid_spec,
        compiler_params=pltpu.CompilerParams(
            dimension_semantics=("parallel", "arbitrary")),
        cost_estimate=cost,
    )(counts, kidx, adj_bf16, xw, b, gamma, beta)


# ---------------------------------------------------------------------------
# Kernel 3: classifier head  x @ W + b -> masked log_softmax (padded classes)
# ---------------------------------------------------------------------------
def head_kernel(x_ref, w_ref, b_ref, o_ref, *, c_true):
    logits = jnp.dot(
        x_ref[...].astype(jnp.float32), w_ref[...],
        preferred_element_type=jnp.float32
    ) + b_ref[...]
    lane = jax.lax.broadcasted_iota(jnp.int32, logits.shape, 1)
    mask = lane < c_true
    masked = jnp.where(mask, logits, jnp.full_like(logits, -jnp.inf))
    m = jnp.max(masked, axis=-1, keepdims=True)
    s = logits - m
    lse = jnp.log(jnp.sum(jnp.where(mask, jnp.exp(s), 0.0),
                          axis=-1, keepdims=True))
    o_ref[...] = (s - lse).astype(o_ref.dtype)


def head(x, w, b, *, c_true, tm):
    n, hp = x.shape
    cp = w.shape[1]
    kernel = functools.partial(head_kernel, c_true=c_true)
    return pl.pallas_call(
        kernel,
        out_shape=jax.ShapeDtypeStruct((n, cp), jnp.float32),
        grid=(n // tm,),
        in_specs=[
            pl.BlockSpec((tm, hp), lambda i: (i, 0)),
            pl.BlockSpec((hp, cp), lambda i: (0, 0)),
            pl.BlockSpec((1, cp), lambda i: (0, 0)),
        ],
        out_specs=pl.BlockSpec((tm, cp), lambda i: (i, 0)),
        compiler_params=pltpu.CompilerParams(
            dimension_semantics=("parallel",)),
    )(x, w, b)


# ---------------------------------------------------------------------------
# Full forward pass (eval mode: Dropout == identity)
# ---------------------------------------------------------------------------
@functools.partial(
    jax.jit,
    static_argnames=("hidden_true", "classes_true", "tm", "tk", "n_k_steps"))
def gcn_forward(x, adj_bf16, counts, kidx, layer_params, head_params, *,
                hidden_true, classes_true, tm, tk, n_k_steps):
    for (w, b, gamma, beta) in layer_params:
        xw = feature_transform(x, w, tm=tm)              # x @ W  (once/layer, bf16)
        x = gcn_layer(adj_bf16, xw, b, gamma, beta, counts, kidx,
                      h_true=hidden_true, tm=tm, tk=tk,
                      n_k_steps=n_k_steps)               # agg+bias+LN+ReLU (bf16)
    w_lin, b_lin = head_params
    return head(x, w_lin, b_lin, c_true=classes_true, tm=tm)


# ---------------------------------------------------------------------------
# Host-side tile-level CSR of the (dense-materialized) sparse adjacency
# ---------------------------------------------------------------------------
def build_tile_csr(adj, tm, tk):
    n = adj.shape[0]
    n_i, n_k = n // tm, n // tk
    a = np.asarray(adj).reshape(n_i, tm, n_k, tk)
    nz = np.abs(a).sum(axis=(1, 3)) > 0           # (n_i, n_k) tile-nonzero mask
    counts = nz.sum(axis=1).astype(np.int32)
    max_c = max(int(counts.max()), 1)
    kidx = np.zeros((n_i, max_c), dtype=np.int32)
    for i in range(n_i):
        idx = np.nonzero(nz[i])[0]
        if idx.size:
            kidx[i, :idx.size] = idx
            kidx[i, idx.size:] = idx[-1]          # repeat last valid -> no re-DMA
    return jnp.asarray(counts), jnp.asarray(kidx), int(max_c)


# ---------------------------------------------------------------------------
# Parameter construction: true-shaped params + zero-padded copies for kernels
# ---------------------------------------------------------------------------
def init_gcn_params(key, num_node_features, num_classes, hidden_channels,
                    num_layers):
    layers = []
    for i in range(num_layers):
        in_ch = num_node_features if i == 0 else hidden_channels
        key, kw, kb, kbeta = jax.random.split(key, 4)
        limit = (6.0 / (in_ch + hidden_channels)) ** 0.5
        w = jax.random.uniform(kw, (in_ch, hidden_channels),
                               minval=-limit, maxval=limit, dtype=jnp.float32)
        b = 0.1 * jax.random.normal(kb, (1, hidden_channels), jnp.float32)
        gamma = jnp.ones((1, hidden_channels), jnp.float32)
        beta = 0.1 * jax.random.normal(kbeta, (1, hidden_channels), jnp.float32)
        layers.append((w, b, gamma, beta))
    key, kw, kb = jax.random.split(key, 3)
    limit = (1.0 / hidden_channels) ** 0.5
    w_lin = jax.random.uniform(kw, (hidden_channels, num_classes),
                               minval=-limit, maxval=limit, dtype=jnp.float32)
    b_lin = jax.random.uniform(kb, (1, num_classes),
                               minval=-limit, maxval=limit, dtype=jnp.float32)
    return layers, (w_lin, b_lin)


def pad_params(layer_params, head_params, num_node_features, hidden_channels,
               num_classes, h_pad, c_pad):
    padded_layers = []
    for i, (w, b, gamma, beta) in enumerate(layer_params):
        in_true = w.shape[0]
        in_pad = num_node_features if i == 0 else h_pad
        wp = jnp.zeros((in_pad, h_pad), jnp.float32)
        wp = wp.at[:in_true, :hidden_channels].set(w)
        bp = jnp.zeros((1, h_pad), jnp.float32).at[:, :hidden_channels].set(b)
        gp = jnp.zeros((1, h_pad), jnp.float32).at[:, :hidden_channels].set(gamma)
        bep = jnp.zeros((1, h_pad), jnp.float32).at[:, :hidden_channels].set(beta)
        padded_layers.append((wp, bp, gp, bep))
    w_lin, b_lin = head_params
    wlp = jnp.zeros((h_pad, c_pad), jnp.float32)
    wlp = wlp.at[:hidden_channels, :num_classes].set(w_lin)
    blp = jnp.zeros((1, c_pad), jnp.float32).at[:, :num_classes].set(b_lin)
    return padded_layers, (wlp, blp)


# ---------------------------------------------------------------------------
# Pure-JAX reference (true shapes, high precision, f32 end-to-end)
# ---------------------------------------------------------------------------
def gcn_forward_ref(x, adj, layer_params, head_params):
    hi = jax.lax.Precision.HIGHEST
    for (w, b, gamma, beta) in layer_params:
        h = jnp.dot(adj, jnp.dot(x, w, precision=hi), precision=hi) + b
        mean = jnp.mean(h, axis=-1, keepdims=True)
        var = jnp.mean((h - mean) ** 2, axis=-1, keepdims=True)
        h = (h - mean) * jax.lax.rsqrt(var + 1e-5) * gamma + beta
        x = jnp.maximum(h, 0.0)
    w_lin, b_lin = head_params
    logits = jnp.dot(x, w_lin, precision=hi) + b_lin
    return jax.nn.log_softmax(logits, axis=-1)


if __name__ == "__main__":
    key = jax.random.PRNGKey(0)

    num_nodes = 256
    num_node_features = 8
    hidden_channels = 32
    num_classes = 4
    num_layers = 2

    h_pad = _round_up(hidden_channels, 128)   # 128 -> lane-dense layers
    c_pad = _round_up(num_classes, 128)       # 128 -> lane-dense head
    tm, tk = 128, 128                         # demo tiles; see table at top

    k_x, k_adj, k_par = jax.random.split(key, 3)
    x = jax.random.normal(k_x, (num_nodes, num_node_features), jnp.float32)
    # Dense materialization of the SparseTensor adjacency (reduce="add").
    adj = (jax.random.uniform(k_adj, (num_nodes, num_nodes)) < 0.1
           ).astype(jnp.float32)
    # Zero one adjacency tile so the block-sparse skip path is exercised
    # (row tile 0 -> 1 nonzero col-tile, row tile 1 -> 2).
    adj = adj.at[:tm, tk:].set(0.0)
    adj_bf16 = adj.astype(jnp.bfloat16)       # exact for a 0/1 matrix

    counts, kidx, n_k_steps = build_tile_csr(adj, tm, tk)

    layer_params, head_params = init_gcn_params(
        k_par, num_node_features, num_classes, hidden_channels, num_layers)
    layer_params_p, head_params_p = pad_params(
        layer_params, head_params, num_node_features, hidden_channels,
        num_classes, h_pad, c_pad)

    out_pad = gcn_forward(x, adj_bf16, counts, kidx,
                          layer_params_p, head_params_p,
                          hidden_true=hidden_channels,
                          classes_true=num_classes,
                          tm=tm, tk=tk, n_k_steps=n_k_steps)
    out_pad = jax.block_until_ready(out_pad)
    out = out_pad[:, :num_classes].astype(jnp.float32)

    ref = gcn_forward_ref(x, adj, layer_params, head_params)
    assert out.shape == (num_nodes, num_classes)
    # bf16 activation storage (XW + inter-layer x, per perf review) costs
    # O(1e-2) absolute in the log-probs; f32 MXU accumulation keeps reductions
    # accurate.  Validate at a tolerance consistent with that rounding budget.
    max_err = float(jnp.max(jnp.abs(out - ref)))
    assert jnp.allclose(out, ref, atol=5e-2, rtol=5e-2), max_err

    print("KERNEL_OK")
</pallas_src>

<mosaic_0001>
module attributes {stable_mosaic.version = 11 : i64} {
  func.func @gcn_agg_kernel(%arg0: i32, %arg1: i32, %arg2: memref<2xi32, #tpu.memory_space<smem>>, %arg3: memref<2x2xi32, #tpu.memory_space<smem>>, %arg4: memref<128x128xbf16, #tpu.memory_space<vmem>>, %arg5: memref<128x128xbf16, #tpu.memory_space<vmem>>, %arg6: memref<1x128xf32, #tpu.memory_space<vmem>>, %arg7: memref<1x128xf32, #tpu.memory_space<vmem>>, %arg8: memref<1x128xf32, #tpu.memory_space<vmem>>, %arg9: memref<128x128xbf16, #tpu.memory_space<vmem>>, %arg10: memref<128x128xf32, #tpu.memory_space<vmem>>) attributes {dimension_semantics = [#tpu.dimension_semantics<parallel>, #tpu.dimension_semantics<arbitrary>], iteration_bounds = array<i64: 2, 2>, scalar_prefetch = 2 : i64, scratch_operands = 1 : i64, tpu.core_type = #tpu.core_type<tc>, window_params = [{transform_indices = @transform_0, window_bounds = array<i64: 128, 128>}, {transform_indices = @transform_1, window_bounds = array<i64: 128, 128>}, {pipeline_mode = #tpu.pipeline_mode<synchronous>, transform_indices = @transform_2, window_bounds = array<i64: 1, 128>}, {pipeline_mode = #tpu.pipeline_mode<synchronous>, transform_indices = @transform_3, window_bounds = array<i64: 1, 128>}, {pipeline_mode = #tpu.pipeline_mode<synchronous>, transform_indices = @transform_4, window_bounds = array<i64: 1, 128>}, {transform_indices = @transform_5, window_bounds = array<i64: 128, 128>}]} {
    %c0_i32 = arith.constant 0 : i32
    %0 = arith.cmpi eq, %arg1, %c0_i32 : i32
    %1 = arith.extui %0 : i1 to i32
    %c0_i32_0 = arith.constant 0 : i32
    %2 = arith.cmpi ne, %1, %c0_i32_0 : i32
    scf.if %2 {
      %cst = arith.constant 0.000000e+00 : f32
      %11 = vector.broadcast %cst : f32 to vector<128x128xf32>
      %c0 = arith.constant 0 : index
      %c0_3 = arith.constant 0 : index
      %12 = vector.load %arg10[%c0, %c0_3] : memref<128x128xf32, #tpu.memory_space<vmem>>, vector<128x128xf32>
      tpu.vector_store %arg10[%c0, %c0_3], %11 {strides = array<i32>} : memref<128x128xf32, #tpu.memory_space<vmem>>, vector<128x128xf32>,
    } else {
    }
    %3 = arith.index_cast %arg0 : i32 to index
    %4 = memref.load %arg2[%3] : memref<2xi32, #tpu.memory_space<smem>>
    %5 = arith.cmpi slt, %arg1, %4 : i32
    %6 = arith.extui %5 : i1 to i32
    %c0_i32_1 = arith.constant 0 : i32
    %7 = arith.cmpi ne, %6, %c0_i32_1 : i32
    scf.if %7 {
      %c0 = arith.constant 0 : index
      %c0_3 = arith.constant 0 : index
      %11 = vector.load %arg10[%c0, %c0_3] : memref<128x128xf32, #tpu.memory_space<vmem>>, vector<128x128xf32>
      %c0_4 = arith.constant 0 : index
      %c0_5 = arith.constant 0 : index
      %12 = vector.load %arg4[%c0_4, %c0_5] : memref<128x128xbf16, #tpu.memory_space<vmem>>, vector<128x128xbf16>
      %c0_6 = arith.constant 0 : index
      %c0_7 = arith.constant 0 : index
      %13 = vector.load %arg5[%c0_6, %c0_7] : memref<128x128xbf16, #tpu.memory_space<vmem>>, vector<128x128xbf16>
      %cst = arith.constant dense<0.000000e+00> : vector<128x128xf32>
      %14 = tpu.matmul %12, %13, %cst {dimension_numbers = #tpu.dot_dimension_numbers<[1], [0], [0], [1], [0, 0, 1, 1], [], []>} : vector<128x128xbf16>, vector<128x128xbf16>, vector<128x128xf32> -> vector<128x128xf32>
      %15 = arith.addf %11, %14 : vector<128x128xf32>
      %c0_8 = arith.constant 0 : index
      %c0_9 = arith.constant 0 : index
      %16 = vector.load %arg10[%c0_8, %c0_9] : memref<128x128xf32, #tpu.memory_space<vmem>>, vector<128x128xf32>
      tpu.vector_store %arg10[%c0_8, %c0_9], %15 {strides = array<i32>} : memref<128x128xf32, #tpu.memory_space<vmem>>, vector<128x128xf32>,
    } else {
    }
    %c1_i32 = arith.constant 1 : i32
    %8 = arith.cmpi eq, %arg1, %c1_i32 : i32
    %9 = arith.extui %8 : i1 to i32
    %c0_i32_2 = arith.constant 0 : i32
    %10 = arith.cmpi ne, %9, %c0_i32_2 : i32
    scf.if %10 {
      %c0 = arith.constant 0 : index
      %c0_3 = arith.constant 0 : index
      %11 = vector.load %arg10[%c0, %c0_3] : memref<128x128xf32, #tpu.memory_space<vmem>>, vector<128x128xf32>
      %c0_4 = arith.constant 0 : index
      %c0_5 = arith.constant 0 : index
      %12 = vector.load %arg6[%c0_4, %c0_5] : memref<1x128xf32, #tpu.memory_space<vmem>>, vector<1x128xf32>
      %13 = vector.broadcast %12 : vector<1x128xf32> to vector<128x128xf32>
      %14 = arith.addf %11, %13 : vector<128x128xf32>
      %cst = arith.constant dense<0.000000e+00> : vector<128xf32>
      %15 = vector.multi_reduction <add>, %14, %cst [1] : vector<128x128xf32> to vector<128xf32>
      %16 = vector.shape_cast %15 : vector<128xf32> to vector<128x1xf32>
      %cst_6 = arith.constant 3.125000e-02 : f32
      %17 = vector.broadcast %cst_6 : f32 to vector<128x1xf32>
      %18 = arith.mulf %16, %17 : vector<128x1xf32>
      %19 = vector.broadcast %18 : vector<128x1xf32> to vector<128x128xf32>
      %20 = arith.subf %14, %19 : vector<128x128xf32>
      %21 = tpu.iota {dimensions = array<i32: 1>} : vector<128x128xi32>
      %c32_i32 = arith.constant 32 : i32
      %22 = vector.broadcast %c32_i32 : i32 to vector<128x128xi32>
      %23 = arith.cmpi slt, %21, %22 : vector<128x128xi32>
      %24 = arith.mulf %20, %20 : vector<128x128xf32>
      %cst_7 = arith.constant 0.000000e+00 : f32
      %25 = vector.broadcast %cst_7 : f32 to vector<128x128xf32>
      %26 = arith.select %23, %24, %25 : vector<128x128xi1>, vector<128x128xf32>
      %cst_8 = arith.constant dense<0.000000e+00> : vector<128xf32>
      %27 = vector.multi_reduction <add>, %26, %cst_8 [1] : vector<128x128xf32> to vector<128xf32>
      %28 = vector.shape_cast %27 : vector<128xf32> to vector<128x1xf32>
      %cst_9 = arith.constant 3.125000e-02 : f32
      %29 = vector.broadcast %cst_9 : f32 to vector<128x1xf32>
      %30 = arith.mulf %28, %29 : vector<128x1xf32>
      %cst_10 = arith.constant 9.99999974E-6 : f32
      %31 = vector.broadcast %cst_10 : f32 to vector<128x1xf32>
      %32 = arith.addf %30, %31 : vector<128x1xf32>
      %33 = math.rsqrt %32 : vector<128x1xf32>
      %34 = vector.broadcast %33 : vector<128x1xf32> to vector<128x128xf32>
      %35 = arith.mulf %20, %34 : vector<128x128xf32>
      %c0_11 = arith.constant 0 : index
      %c0_12 = arith.constant 0 : index
      %36 = vector.load %arg7[%c0_11, %c0_12] : memref<1x128xf32, #tpu.memory_space<vmem>>, vector<1x128xf32>
      %37 = vector.broadcast %36 : vector<1x128xf32> to vector<128x128xf32>
      %38 = arith.mulf %35, %37 : vector<128x128xf32>
      %c0_13 = arith.constant 0 : index
      %c0_14 = arith.constant 0 : index
      %39 = vector.load %arg8[%c0_13, %c0_14] : memref<1x128xf32, #tpu.memory_space<vmem>>, vector<1x128xf32>
      %40 = vector.broadcast %39 : vector<1x128xf32> to vector<128x128xf32>
      %41 = arith.addf %38, %40 : vector<128x128xf32>
      %cst_15 = arith.constant 0.000000e+00 : f32
      %42 = vector.broadcast %cst_15 : f32 to vector<128x128xf32>
      %43 = arith.maximumf %41, %42 : vector<128x128xf32>
      %44 = arith.truncf %43 : vector<128x128xf32> to vector<128x128xbf16>
      %c0_16 = arith.constant 0 : index
      %c0_17 = arith.constant 0 : index
      %45 = vector.load %arg9[%c0_16, %c0_17] : memref<128x128xbf16, #tpu.memory_space<vmem>>, vector<128x128xbf16>
      tpu.vector_store %arg9[%c0_16, %c0_17], %44 {strides = array<i32>} : memref<128x128xbf16, #tpu.memory_space<vmem>>, vector<128x128xbf16>,
    } else {
    }
    return
  }
  func.func @transform_0(%arg0: i32, %arg1: i32, %arg2: memref<2xi32, #tpu.memory_space<smem>>, %arg3: memref<2x2xi32, #tpu.memory_space<smem>>) -> (i32, i32) {
    %0 = arith.index_cast %arg0 : i32 to index
    %1 = arith.index_cast %arg1 : i32 to index
    %2 = memref.load %arg3[%0, %1] : memref<2x2xi32, #tpu.memory_space<smem>>
    %c0_i32 = arith.constant 0 : i32
    return %arg0, %2 : i32, i32
  }
  func.func @transform_1(%arg0: i32, %arg1: i32, %arg2: memref<2xi32, #tpu.memory_space<smem>>, %arg3: memref<2x2xi32, #tpu.memory_space<smem>>) -> (i32, i32) {
    %0 = arith.index_cast %arg0 : i32 to index
    %1 = arith.index_cast %arg1 : i32 to index
    %2 = memref.load %arg3[%0, %1] : memref<2x2xi32, #tpu.memory_space<smem>>
    %c0_i32 = arith.constant 0 : i32
    %c0_i32_0 = arith.constant 0 : i32
    return %2, %c0_i32 : i32, i32
  }
  func.func @transform_2(%arg0: i32, %arg1: i32, %arg2: memref<2xi32, #tpu.memory_space<smem>>, %arg3: memref<2x2xi32, #tpu.memory_space<smem>>) -> (i32, i32) {
    %c0_i32 = arith.constant 0 : i32
    %c0_i32_0 = arith.constant 0 : i32
    %c0_i32_1 = arith.constant 0 : i32
    return %c0_i32, %c0_i32_0 : i32, i32
  }
  func.func @transform_3(%arg0: i32, %arg1: i32, %arg2: memref<2xi32, #tpu.memory_space<smem>>, %arg3: memref<2x2xi32, #tpu.memory_space<smem>>) -> (i32, i32) {
    %c0_i32 = arith.constant 0 : i32
    %c0_i32_0 = arith.constant 0 : i32
    %c0_i32_1 = arith.constant 0 : i32
    return %c0_i32, %c0_i32_0 : i32, i32
  }
  func.func @transform_4(%arg0: i32, %arg1: i32, %arg2: memref<2xi32, #tpu.memory_space<smem>>, %arg3: memref<2x2xi32, #tpu.memory_space<smem>>) -> (i32, i32) {
    %c0_i32 = arith.constant 0 : i32
    %c0_i32_0 = arith.constant 0 : i32
    %c0_i32_1 = arith.constant 0 : i32
    return %c0_i32, %c0_i32_0 : i32, i32
  }
  func.func @transform_5(%arg0: i32, %arg1: i32, %arg2: memref<2xi32, #tpu.memory_space<smem>>, %arg3: memref<2x2xi32, #tpu.memory_space<smem>>) -> (i32, i32) {
    %c0_i32 = arith.constant 0 : i32
    %c0_i32_0 = arith.constant 0 : i32
    return %arg0, %c0_i32 : i32, i32
  }
}

module attributes {stable_mosaic.version = 11 : i64} {
  func.func @xw_kernel(%arg0: i32, %arg1: memref<128x128xbf16, #tpu.memory_space<vmem>>, %arg2: memref<128x128xf32, #tpu.memory_space<vmem>>, %arg3: memref<128x128xbf16, #tpu.memory_space<vmem>>) attributes {dimension_semantics = [#tpu.dimension_semantics<parallel>], iteration_bounds = array<i64: 2>, scalar_prefetch = 0 : i64, scratch_operands = 0 : i64, tpu.core_type = #tpu.core_type<tc>, window_params = [{transform_indices = @transform_0, window_bounds = array<i64: 128, 128>}, {pipeline_mode = #tpu.pipeline_mode<synchronous>, transform_indices = @transform_1, window_bounds = array<i64: 128, 128>}, {transform_indices = @transform_2, window_bounds = array<i64: 128, 128>}]} {
    %c0 = arith.constant 0 : index
    %c0_0 = arith.constant 0 : index
    %0 = vector.load %arg1[%c0, %c0_0] : memref<128x128xbf16, #tpu.memory_space<vmem>>, vector<128x128xbf16>
    %1 = arith.extf %0 : vector<128x128xbf16> to vector<128x128xf32>
    %c0_1 = arith.constant 0 : index
    %c0_2 = arith.constant 0 : index
    %2 = vector.load %arg2[%c0_1, %c0_2] : memref<128x128xf32, #tpu.memory_space<vmem>>, vector<128x128xf32>
    %cst = arith.constant dense<0.000000e+00> : vector<128x128xf32>
    %3 = tpu.matmul %1, %2, %cst {dimension_numbers = #tpu.dot_dimension_numbers<[1], [0], [0], [1], [0, 0, 1, 1], [], []>} : vector<128x128xf32>, vector<128x128xf32>, vector<128x128xf32> -> vector<128x128xf32>
    %4 = arith.truncf %3 : vector<128x128xf32> to vector<128x128xbf16>
    %c0_3 = arith.constant 0 : index
    %c0_4 = arith.constant 0 : index
    %5 = vector.load %arg3[%c0_3, %c0_4] : memref<128x128xbf16, #tpu.memory_space<vmem>>, vector<128x128xbf16>
    tpu.vector_store %arg3[%c0_3, %c0_4], %4 {strides = array<i32>} : memref<128x128xbf16, #tpu.memory_space<vmem>>, vector<128x128xbf16>,
    return
  }
  func.func @transform_0(%arg0: i32) -> (i32, i32) {
    %c0_i32 = arith.constant 0 : i32
    %c0_i32_0 = arith.constant 0 : i32
    return %arg0, %c0_i32 : i32, i32
  }
  func.func @transform_1(%arg0: i32) -> (i32, i32) {
    %c0_i32 = arith.constant 0 : i32
    %c0_i32_0 = arith.constant 0 : i32
    %c0_i32_1 = arith.constant 0 : i32
    return %c0_i32, %c0_i32_0 : i32, i32
  }
  func.func @transform_2(%arg0: i32) -> (i32, i32) {
    %c0_i32 = arith.constant 0 : i32
    %c0_i32_0 = arith.constant 0 : i32
    return %arg0, %c0_i32 : i32, i32
  }
}

module attributes {stable_mosaic.version = 11 : i64} {
  func.func @xw_kernel(%arg0: i32, %arg1: memref<128x8xf32, #tpu.memory_space<vmem>>, %arg2: memref<8x128xf32, #tpu.memory_space<vmem>>, %arg3: memref<128x128xbf16, #tpu.memory_space<vmem>>) attributes {dimension_semantics = [#tpu.dimension_semantics<parallel>], iteration_bounds = array<i64: 2>, scalar_prefetch = 0 : i64, scratch_operands = 0 : i64, tpu.core_type = #tpu.core_type<tc>, window_params = [{transform_indices = @transform_0, window_bounds = array<i64: 128, 8>}, {pipeline_mode = #tpu.pipeline_mode<synchronous>, transform_indices = @transform_1, window_bounds = array<i64: 8, 128>}, {transform_indices = @transform_2, window_bounds = array<i64: 128, 128>}]} {
    %c0 = arith.constant 0 : index
    %c0_0 = arith.constant 0 : index
    %0 = vector.load %arg1[%c0, %c0_0] : memref<128x8xf32, #tpu.memory_space<vmem>>, vector<128x8xf32>
    %c0_1 = arith.constant 0 : index
    %c0_2 = arith.constant 0 : index
    %1 = vector.load %arg2[%c0_1, %c0_2] : memref<8x128xf32, #tpu.memory_space<vmem>>, vector<8x128xf32>
    %cst = arith.constant dense<0.000000e+00> : vector<128x128xf32>
    %2 = tpu.matmul %0, %1, %cst {dimension_numbers = #tpu.dot_dimension_numbers<[1], [0], [0], [1], [0, 0, 1, 1], [], []>} : vector<128x8xf32>, vector<8x128xf32>, vector<128x128xf32> -> vector<128x128xf32>
    %3 = arith.truncf %2 : vector<128x128xf32> to vector<128x128xbf16>
    %c0_3 = arith.constant 0 : index
    %c0_4 = arith.constant 0 : index
    %4 = vector.load %arg3[%c0_3, %c0_4] : memref<128x128xbf16, #tpu.memory_space<vmem>>, vector<128x128xbf16>
    tpu.vector_store %arg3[%c0_3, %c0_4], %3 {strides = array<i32>} : memref<128x128xbf16, #tpu.memory_space<vmem>>, vector<128x128xbf16>,
    return
  }
  func.func @transform_0(%arg0: i32) -> (i32, i32) {
    %c0_i32 = arith.constant 0 : i32
    %c0_i32_0 = arith.constant 0 : i32
    return %arg0, %c0_i32 : i32, i32
  }
  func.func @transform_1(%arg0: i32) -> (i32, i32) {
    %c0_i32 = arith.constant 0 : i32
    %c0_i32_0 = arith.constant 0 : i32
    %c0_i32_1 = arith.constant 0 : i32
    return %c0_i32, %c0_i32_0 : i32, i32
  }
  func.func @transform_2(%arg0: i32) -> (i32, i32) {
    %c0_i32 = arith.constant 0 : i32
    %c0_i32_0 = arith.constant 0 : i32
    return %arg0, %c0_i32 : i32, i32
  }
}

module attributes {stable_mosaic.version = 11 : i64} {
  func.func @head_kernel(%arg0: i32, %arg1: memref<128x128xbf16, #tpu.memory_space<vmem>>, %arg2: memref<128x128xf32, #tpu.memory_space<vmem>>, %arg3: memref<1x128xf32, #tpu.memory_space<vmem>>, %arg4: memref<128x128xf32, #tpu.memory_space<vmem>>) attributes {dimension_semantics = [#tpu.dimension_semantics<parallel>], iteration_bounds = array<i64: 2>, scalar_prefetch = 0 : i64, scratch_operands = 0 : i64, tpu.core_type = #tpu.core_type<tc>, window_params = [{transform_indices = @transform_0, window_bounds = array<i64: 128, 128>}, {pipeline_mode = #tpu.pipeline_mode<synchronous>, transform_indices = @transform_1, window_bounds = array<i64: 128, 128>}, {pipeline_mode = #tpu.pipeline_mode<synchronous>, transform_indices = @transform_2, window_bounds = array<i64: 1, 128>}, {transform_indices = @transform_3, window_bounds = array<i64: 128, 128>}]} {
    %c0 = arith.constant 0 : index
    %c0_0 = arith.constant 0 : index
    %0 = vector.load %arg1[%c0, %c0_0] : memref<128x128xbf16, #tpu.memory_space<vmem>>, vector<128x128xbf16>
    %1 = arith.extf %0 : vector<128x128xbf16> to vector<128x128xf32>
    %c0_1 = arith.constant 0 : index
    %c0_2 = arith.constant 0 : index
    %2 = vector.load %arg2[%c0_1, %c0_2] : memref<128x128xf32, #tpu.memory_space<vmem>>, vector<128x128xf32>
    %cst = arith.constant dense<0.000000e+00> : vector<128x128xf32>
    %3 = tpu.matmul %1, %2, %cst {dimension_numbers = #tpu.dot_dimension_numbers<[1], [0], [0], [1], [0, 0, 1, 1], [], []>} : vector<128x128xf32>, vector<128x128xf32>, vector<128x128xf32> -> vector<128x128xf32>
    %c0_3 = arith.constant 0 : index
    %c0_4 = arith.constant 0 : index
    %4 = vector.load %arg3[%c0_3, %c0_4] : memref<1x128xf32, #tpu.memory_space<vmem>>, vector<1x128xf32>
    %5 = vector.broadcast %4 : vector<1x128xf32> to vector<128x128xf32>
    %6 = arith.addf %3, %5 : vector<128x128xf32>
    %7 = tpu.iota {dimensions = array<i32: 1>} : vector<128x128xi32>
    %c4_i32 = arith.constant 4 : i32
    %8 = vector.broadcast %c4_i32 : i32 to vector<128x128xi32>
    %9 = arith.cmpi slt, %7, %8 : vector<128x128xi32>
    %cst_5 = arith.constant 0xFF800000 : f32
    %10 = vector.broadcast %cst_5 : f32 to vector<128x128xf32>
    %11 = arith.select %9, %6, %10 : vector<128x128xi1>, vector<128x128xf32>
    %cst_6 = arith.constant dense<0xFF800000> : vector<128xf32>
    %12 = vector.multi_reduction <maximumf>, %11, %cst_6 [1] : vector<128x128xf32> to vector<128xf32>
    %13 = vector.shape_cast %12 : vector<128xf32> to vector<128x1xf32>
    %14 = vector.broadcast %13 : vector<128x1xf32> to vector<128x128xf32>
    %15 = arith.subf %6, %14 : vector<128x128xf32>
    %16 = math.exp %15 : vector<128x128xf32>
    %cst_7 = arith.constant 0.000000e+00 : f32
    %17 = vector.broadcast %cst_7 : f32 to vector<128x128xf32>
    %18 = arith.select %9, %16, %17 : vector<128x128xi1>, vector<128x128xf32>
    %cst_8 = arith.constant dense<0.000000e+00> : vector<128xf32>
    %19 = vector.multi_reduction <add>, %18, %cst_8 [1] : vector<128x128xf32> to vector<128xf32>
    %20 = vector.shape_cast %19 : vector<128xf32> to vector<128x1xf32>
    %21 = math.log %20 : vector<128x1xf32>
    %22 = vector.broadcast %21 : vector<128x1xf32> to vector<128x128xf32>
    %23 = arith.subf %15, %22 : vector<128x128xf32>
    %c0_9 = arith.constant 0 : index
    %c0_10 = arith.constant 0 : index
    %24 = vector.load %arg4[%c0_9, %c0_10] : memref<128x128xf32, #tpu.memory_space<vmem>>, vector<128x128xf32>
    tpu.vector_store %arg4[%c0_9, %c0_10], %23 {strides = array<i32>} : memref<128x128xf32, #tpu.memory_space<vmem>>, vector<128x128xf32>,
    return
  }
  func.func @transform_0(%arg0: i32) -> (i32, i32) {
    %c0_i32 = arith.constant 0 : i32
    %c0_i32_0 = arith.constant 0 : i32
    return %arg0, %c0_i32 : i32, i32
  }
  func.func @transform_1(%arg0: i32) -> (i32, i32) {
    %c0_i32 = arith.constant 0 : i32
    %c0_i32_0 = arith.constant 0 : i32
    %c0_i32_1 = arith.constant 0 : i32
    return %c0_i32, %c0_i32_0 : i32, i32
  }
  func.func @transform_2(%arg0: i32) -> (i32, i32) {
    %c0_i32 = arith.constant 0 : i32
    %c0_i32_0 = arith.constant 0 : i32
    %c0_i32_1 = arith.constant 0 : i32
    return %c0_i32, %c0_i32_0 : i32, i32
  }
  func.func @transform_3(%arg0: i32) -> (i32, i32) {
    %c0_i32 = arith.constant 0 : i32
    %c0_i32_0 = arith.constant 0 : i32
    return %arg0, %c0_i32 : i32, i32
  }
}

</mosaic_0001>

<bundles_post_ra>
// kernel: gcn_forward.7
= control target key start
LH: loop header
LB: loop body
LE: loop exit
PB: predicated region body
PF: predicated region fallthrough
CT: control target
= control target key end

     0   :  { %s524_s9 = smov 0   ;;  %s606_s0 = inlined_call_operand.vmem [shape: bf16[256,128], index: 0, kind: input, shape index: {}]   ;;  %s607_s1 = inlined_call_operand.vmem [shape: f32[128,128], index: 1, kind: input, shape index: {}]   ;;  %s608_s2 = inlined_call_operand.vmem [shape: bf16[256,128], index: 2, kind: output, shape index: {}]  }
   0x1 LB: > { %s348_s10 = sadd.s32 4294967295, %s507_s9   ;;  %p352_p0 = scmp.ge.s32.totalorder %s507_s9, 1  ;;  %s507_s9 = sphi %s524_s9, %s12_s9  }
   0x2   : > { %p113_p1 = scmp.lt.s32.totalorder %s507_s9, 3 }
   0x4   : > { %p114_p2 = pnand %p352_p0, %p113_p1 }
   0x5   : > { %s353_s23 = sshll.u32 (!%p114_p2), %s348_s10, 4 }
   0x6   : > { %117 = sbr.rel (%p114_p2) target bundleno = 205 (0xcd), region = 28  ;;  %p136_p3 = scmp.lt.s32.totalorder (!%p114_p2), %s353_s23, 31 }
   0xb   : > { %v194_v0 = vld [vmem:[%s607_s1 + $0x78] sm:$0xff]  ;;  %v193_v1 = vld [vmem:[%s607_s1 + $0x70] sm:$0xff]  ;;  %v192_v2 = vld [vmem:[%s607_s1 + $0x68] sm:$0xff]  ;;  %s610_s23 = smov (!%p136_p3, %s353_s23), 31 }
   0xc   : > { %195 = vmatpush.msra.mxu0 %v194_v0  ;;  %445 = vmatpush.msra.mxu1 %v194_v0  ;;  %v191_v3 = vld [vmem:[%s607_s1 + $0x60] sm:$0xff]  ;;  %v190_v4 = vld [vmem:[%s607_s1 + $0x58] sm:$0xff]  ;;  %v189_v5 = vld [vmem:[%s607_s1 + $0x50] sm:$0xff]  ;;  %s354_s8 = sshll.u32 %s610_s23, 2 }
   0xd   : > { %446 = vmatpush.msra.mxu2 %v194_v0  ;;  %447 = vmatpush.msra.mxu3 %v194_v0  ;;  %v188_v6 = vld [vmem:[%s607_s1 + $0x48] sm:$0xff]  ;;  %v187_v7 = vld [vmem:[%s607_s1 + $0x40] sm:$0xff]  ;;  %v186_v8 = vld [vmem:[%s607_s1 + $0x38] sm:$0xff]  ;;  %s579_s14 = scalar_lea.vmem %s606_s0, %s354_s8  ;;  %s145_s24 = scalar_lea.vmem %s608_s2, %s354_s8 }
   0xe   : > { %196 = vmatpush.msra.mxu0 %v193_v1  ;;  %448 = vmatpush.msra.mxu1 %v193_v1  ;;  %v185_v9 = vld [vmem:[%s607_s1 + $0x30] sm:$0xff]  ;;  %v184_v10 = vld [vmem:[%s607_s1 + $0x28] sm:$0xff]  ;;  %v183_v11 = vld [vmem:[%s607_s1 + $0x20] sm:$0xff] }
   0xf   : > { %449 = vmatpush.msra.mxu2 %v193_v1  ;;  %450 = vmatpush.msra.mxu3 %v193_v1  ;;  %v182_v12 = vld [vmem:[%s607_s1 + $0x18] sm:$0xff]  ;;  %v181_v13 = vld [vmem:[%s607_s1 + $0x10] sm:$0xff]  ;;  %v180_v14 = vld [vmem:[%s607_s1 + $0x8] sm:$0xff] }
  0x10   : > { %197 = vmatpush.msra.mxu0 %v192_v2  ;;  %451 = vmatpush.msra.mxu1 %v192_v2  ;;  %v360_v15 = vld [vmem:[%s579_s14] sm:$0xff]   ;;  %v432_v16 = vld [vmem:[%s579_s14 + $0x10] sm:$0xff]   ;;  %v431_v28 = vld [vmem:[%s579_s14 + $0x8] sm:$0xff]  }
  0x11   : > { %452 = vmatpush.msra.mxu2 %v192_v2  ;;  %453 = vmatpush.msra.mxu3 %v192_v2  ;;  %v434_v17 = vld [vmem:[%s579_s14 + $0x20] sm:$0xff]   ;;  %v436_v18 = vld [vmem:[%s579_s14 + $0x30] sm:$0xff]   ;;  %v361_v20 = vunpack.c.l.bf16 %v360_v15  ;;  %v369_v21 = vunpack.c.l.bf16 %v432_v16  ;;  %v362_v24 = vunpack.c.h.bf16 %v360_v15  ;;  %v370_v25 = vunpack.c.h.bf16 %v432_v16  ;;  %v433_v29 = vld [vmem:[%s579_s14 + $0x18] sm:$0xff]  }
  0x12   : > { %198 = vmatpush.msra.mxu0 %v191_v3  ;;  %454 = vmatpush.msra.mxu1 %v191_v3  ;;  %v179_v19 = vld [vmem:[%s607_s1] sm:$0xff]  ;;  %v377_v22 = vunpack.c.l.bf16 %v434_v17  ;;  %v385_v23 = vunpack.c.l.bf16 %v436_v18  ;;  %v378_v26 = vunpack.c.h.bf16 %v434_v17  ;;  %v386_v27 = vunpack.c.h.bf16 %v436_v18  ;;  %v435_v30 = vld [vmem:[%s579_s14 + $0x28] sm:$0xff]   ;;  %v437_v31 = vld [vmem:[%s579_s14 + $0x38] sm:$0xff]  }
  0x13   : > { %455 = vmatpush.msra.mxu2 %v191_v3  ;;  %456 = vmatpush.msra.mxu3 %v191_v3  ;;  %v365_v32 = vunpack.c.l.bf16 %v431_v28  ;;  %v373_v33 = vunpack.c.l.bf16 %v433_v29  ;;  %v381_v34 = vunpack.c.l.bf16 %v435_v30  ;;  %v389_v35 = vunpack.c.l.bf16 %v437_v31 }
  0x14   : > { %199 = vmatpush.msra.mxu0 %v190_v4  ;;  %457 = vmatpush.msra.mxu1 %v190_v4  ;;  %v366_v36 = vunpack.c.h.bf16 %v431_v28  ;;  %v374_v37 = vunpack.c.h.bf16 %v433_v29  ;;  %v382_v38 = vunpack.c.h.bf16 %v435_v30  ;;  %v390_v39 = vunpack.c.h.bf16 %v437_v31 }
  0x15   : > { %458 = vmatpush.msra.mxu2 %v190_v4  ;;  %459 = vmatpush.msra.mxu3 %v190_v4 }
  0x16   : > { %200 = vmatpush.msra.mxu0 %v189_v5  ;;  %460 = vmatpush.msra.mxu1 %v189_v5 }
  0x17   : > { %461 = vmatpush.msra.mxu2 %v189_v5  ;;  %462 = vmatpush.msra.mxu3 %v189_v5 }
  0x18   : > { %201 = vmatpush.msra.mxu0 %v188_v6  ;;  %463 = vmatpush.msra.mxu1 %v188_v6 }
  0x19   : > { %464 = vmatpush.msra.mxu2 %v188_v6  ;;  %465 = vmatpush.msra.mxu3 %v188_v6 }
  0x1a   : > { %202 = vmatpush.msra.mxu0 %v187_v7  ;;  %466 = vmatpush.msra.mxu1 %v187_v7 }
  0x1b   : > { %467 = vmatpush.msra.mxu2 %v187_v7  ;;  %468 = vmatpush.msra.mxu3 %v187_v7 }
  0x1c   : > { %203 = vmatpush.msra.mxu0 %v186_v8  ;;  %469 = vmatpush.msra.mxu1 %v186_v8 }
  0x1d   : > { %470 = vmatpush.msra.mxu2 %v186_v8  ;;  %471 = vmatpush.msra.mxu3 %v186_v8 }
  0x1e   : > { %204 = vmatpush.msra.mxu0 %v185_v9  ;;  %472 = vmatpush.msra.mxu1 %v185_v9 }
  0x1f   : > { %473 = vmatpush.msra.mxu2 %v185_v9  ;;  %474 = vmatpush.msra.mxu3 %v185_v9 }
  0x20   : > { %205 = vmatpush.msra.mxu0 %v184_v10  ;;  %475 = vmatpush.msra.mxu1 %v184_v10 }
  0x21   : > { %476 = vmatpush.msra.mxu2 %v184_v10  ;;  %477 = vmatpush.msra.mxu3 %v184_v10 }
  0x22   : > { %206 = vmatpush.msra.mxu0 %v183_v11  ;;  %478 = vmatpush.msra.mxu1 %v183_v11 }
  0x23   : > { %479 = vmatpush.msra.mxu2 %v183_v11  ;;  %480 = vmatpush.msra.mxu3 %v183_v11 }
  0x24   : > { %207 = vmatpush.msra.mxu0 %v182_v12  ;;  %481 = vmatpush.msra.mxu1 %v182_v12 }
  0x25   : > { %482 = vmatpush.msra.mxu2 %v182_v12  ;;  %483 = vmatpush.msra.mxu3 %v182_v12 }
  0x26   : > { %208 = vmatpush.msra.mxu0 %v181_v13  ;;  %484 = vmatpush.msra.mxu1 %v181_v13 }
  0x27   : > { %485 = vmatpush.msra.mxu2 %v181_v13  ;;  %486 = vmatpush.msra.mxu3 %v181_v13 }
  0x28   : > { %209 = vmatpush.msra.mxu0 %v180_v14  ;;  %487 = vmatpush.msra.mxu1 %v180_v14 }
  0x29   : > { %488 = vmatpush.msra.mxu2 %v180_v14  ;;  %489 = vmatpush.msra.mxu3 %v180_v14 }
  0x2a   : > { %210 = vmatpush.msra.mxu0 %v179_v19  ;;  %490 = vmatpush.msra.mxu1 %v179_v19 }
  0x2b   : > { %491 = vmatpush.msra.mxu2 %v179_v19  ;;  %492 = vmatpush.msra.mxu3 %v179_v19 }
  0x2c   : > { %211 = vmatmul.f32.vlgmr.msra.gmra.mxu0 %v361_v20  ;;  %223 = vmatmul.f32.vlgmr.msra.gmra.mxu1 %v369_v21 }
  0x2d   : > { %235 = vmatmul.f32.vlgmr.msra.gmra.mxu2 %v377_v22  ;;  %247 = vmatmul.f32.vlgmr.msra.gmra.mxu3 %v385_v23 }
  0x34   : > { %214 = vmatmul.f32.gmra.mxu0 %v362_v24  ;;  %226 = vmatmul.f32.gmra.mxu1 %v370_v25 }
  0x35   : > { %238 = vmatmul.f32.gmra.mxu2 %v378_v26  ;;  %250 = vmatmul.f32.gmra.mxu3 %v386_v27 }
  0x3c   : > { %217 = vmatmul.f32.gmra.mxu0 %v365_v32  ;;  %229 = vmatmul.f32.gmra.mxu1 %v373_v33 }
  0x3d   : > { %241 = vmatmul.f32.gmra.mxu2 %v381_v34  ;;  %253 = vmatmul.f32.gmra.mxu3 %v389_v35 }
  0x44   : > { %220 = vmatmul.f32.gmra.mxu0 %v366_v36  ;;  %232 = vmatmul.f32.gmra.mxu1 %v374_v37 }
  0x45   : > { %244 = vmatmul.f32.gmra.mxu2 %v382_v38  ;;  %256 = vmatmul.f32.gmra.mxu3 %v390_v39 }
  0xa9   : > { %v212_v40 = vpop.f32.mrf.mxu0  ;;  %v224_v41 = vpop.f32.mrf.mxu1 }
  0xb0   : > { %v236_v42 = vpop.f32.mrf.mxu2  ;;  %v248_v43 = vpop.f32.mrf.mxu3 }
  0xb1   : > { %v215_v44 = vpop.f32.mrf.mxu0  ;;  %v227_v45 = vpop.f32.mrf.mxu1 }
  0xb2   : > { %v394_v46 = vpack.c.bf16 %v215_v44, %v212_v40  ;;  %v404_v47 = vpack.c.bf16 %v227_v45, %v224_v41 }
  0xb4   : > { %395 = vst [vmem:[%s145_s24] sm:$0xff] %v394_v46  }
  0xb5   : > { %439 = vst [vmem:[%s145_s24 + $0x10] sm:$0xff] %v404_v47  }
  0xb8   : > { %v239_v48 = vpop.f32.mrf.mxu2  ;;  %v251_v49 = vpop.f32.mrf.mxu3 }
  0xb9   : > { %v414_v50 = vpack.c.bf16 %v239_v48, %v236_v42  ;;  %v424_v51 = vpack.c.bf16 %v251_v49, %v248_v43  ;;  %v218_v52 = vpop.f32.mrf.mxu0  ;;  %v230_v53 = vpop.f32.mrf.mxu1 }
  0xbb   : > { %441 = vst [vmem:[%s145_s24 + $0x20] sm:$0xff] %v414_v50  }
  0xbc   : > { %443 = vst [vmem:[%s145_s24 + $0x30] sm:$0xff] %v424_v51  }
  0xc0   : > { %v242_v54 = vpop.f32.mrf.mxu2  ;;  %v254_v55 = vpop.f32.mrf.mxu3 }
  0xc1   : > { %v221_v56 = vpop.f32.mrf.mxu0  ;;  %v233_v57 = vpop.f32.mrf.mxu1 }
  0xc2   : > { %v399_v58 = vpack.c.bf16 %v221_v56, %v218_v52  ;;  %v409_v59 = vpack.c.bf16 %v233_v57, %v230_v53 }
  0xc4   : > { %438 = vst [vmem:[%s145_s24 + $0x8] sm:$0xff] %v399_v58  }
  0xc5   : > { %440 = vst [vmem:[%s145_s24 + $0x18] sm:$0xff] %v409_v59  }
  0xc8   : > { %v245_v60 = vpop.f32.mrf.mxu2  ;;  %v257_v61 = vpop.f32.mrf.mxu3 }
  0xc9   : > { %v419_v62 = vpack.c.bf16 %v245_v60, %v242_v54  ;;  %v429_v63 = vpack.c.bf16 %v257_v61, %v254_v55 }
  0xcb   : > { %442 = vst [vmem:[%s145_s24 + $0x28] sm:$0xff] %v419_v62  }
  0xcc   : > { %444 = vst [vmem:[%s145_s24 + $0x38] sm:$0xff] %v429_v63  }
  0xcd PF: > { %s12_s9 = sadd.s32 1, %s507_s9  }
  0xce   : > { %p9_p4 = scmp.ge.s32.totalorder %s12_s9, 4  }
  0xd0   :  { %11 = sbr.rel (!%p9_p4) target bundleno = 1 (0x1), region = 58 }

// kernel: gcn_forward.5
= control target key start
LH: loop header
LB: loop body
LE: loop exit
PB: predicated region body
PF: predicated region fallthrough
CT: control target
= control target key end

     0   :  { %s474_s9 = smov 0   ;;  %s514_s0 = inlined_call_operand.vmem [shape: f32[256,8], index: 0, kind: input, shape index: {}]   ;;  %s515_s1 = inlined_call_operand.vmem [shape: f32[8,128], index: 1, kind: input, shape index: {}]   ;;  %s516_s2 = inlined_call_operand.vmem [shape: bf16[256,128], index: 2, kind: output, shape index: {}]  }
   0x1 LB: > { %s366_s10 = sadd.s32 4294967295, %s457_s9   ;;  %p370_p0 = scmp.ge.s32.totalorder %s457_s9, 1  ;;  %s457_s9 = sphi %s474_s9, %s12_s9  }
   0x2   : > { %p113_p1 = scmp.lt.s32.totalorder %s457_s9, 3 }
   0x4   : > { %p114_p2 = pnand %p370_p0, %p113_p1 }
   0x5   : > { %s371_s13 = sshll.u32 (!%p114_p2), %s366_s10, 4 }
   0x6   : > { %117 = sbr.rel (%p114_p2) target bundleno = 177 (0xb1), region = 28  ;;  %p136_p3 = scmp.lt.s32.totalorder (!%p114_p2), %s371_s13, 31 }
   0xb   : > { %v163_v0 = vld [vmem:[%s515_s1] sm:$0xff]  ;;  %s518_s13 = smov (!%p136_p3, %s371_s13), 31  ;;  %vm164_vm0 = vcmask 64512  }
   0xc   : > { %228 = vmatpush.msra.mxu0 %v163_v0  ;;  %440 = vmatpush.msra.mxu1 %v163_v0  ;;  %s372_s14 = sshll.u32 %s518_s13, 3  ;;  %s374_s18 = sshll.u32 %s518_s13, 2 }
   0xd   : > { %441 = vmatpush.msra.mxu2 %v163_v0  ;;  %442 = vmatpush.msra.mxu3 %v163_v0  ;;  %s139_s17 = scalar_lea.vmem %s514_s0, %s372_s14  ;;  %s145_s21 = scalar_lea.vmem %s516_s2, %s374_s18 }
   0xe   : > { %v147_v1 = vld [vmem:[%s139_s17] sm:$0xff]  ;;  %v148_v5 = vld [vmem:[%s139_s17 + $0x8] sm:$0xff]  ;;  %v149_v9 = vld [vmem:[%s139_s17 + $0x10] sm:$0xff] }
   0xf   : > { %v151_v2 = vld [vmem:[%s139_s17 + $0x20] sm:$0xff]  ;;  %375 = vmatmul.msk.f32.vlgmr.msra.gmra.mxu0 %vm164_vm0, %v147_v1  ;;  %v152_v6 = vld [vmem:[%s139_s17 + $0x28] sm:$0xff]  ;;  %v153_v10 = vld [vmem:[%s139_s17 + $0x30] sm:$0xff] }
  0x10   : > { %v155_v3 = vld [vmem:[%s139_s17 + $0x40] sm:$0xff]  ;;  %379 = vmatmul.msk.f32.vlgmr.msra.gmra.mxu1 %vm164_vm0, %v151_v2  ;;  %v156_v7 = vld [vmem:[%s139_s17 + $0x48] sm:$0xff]  ;;  %v157_v11 = vld [vmem:[%s139_s17 + $0x50] sm:$0xff] }
  0x11   : > { %v159_v4 = vld [vmem:[%s139_s17 + $0x60] sm:$0xff]  ;;  %383 = vmatmul.msk.f32.vlgmr.msra.gmra.mxu2 %vm164_vm0, %v155_v3  ;;  %v160_v8 = vld [vmem:[%s139_s17 + $0x68] sm:$0xff]  ;;  %v161_v12 = vld [vmem:[%s139_s17 + $0x70] sm:$0xff] }
  0x12   : > { %387 = vmatmul.msk.f32.vlgmr.msra.gmra.mxu3 %vm164_vm0, %v159_v4  ;;  %v150_v13 = vld [vmem:[%s139_s17 + $0x18] sm:$0xff] }
  0x13   : > { %v154_v14 = vld [vmem:[%s139_s17 + $0x38] sm:$0xff] }
  0x14   : > { %v158_v15 = vld [vmem:[%s139_s17 + $0x58] sm:$0xff] }
  0x15   : > { %v162_v16 = vld [vmem:[%s139_s17 + $0x78] sm:$0xff] }
  0x17   : > { %376 = vmatmul.msk.f32.gmra.mxu0 %vm164_vm0, %v148_v5 }
  0x18   : > { %380 = vmatmul.msk.f32.gmra.mxu1 %vm164_vm0, %v152_v6 }
  0x19   : > { %384 = vmatmul.msk.f32.gmra.mxu2 %vm164_vm0, %v156_v7 }
  0x1a   : > { %388 = vmatmul.msk.f32.gmra.mxu3 %vm164_vm0, %v160_v8 }
  0x1f   : > { %377 = vmatmul.msk.f32.gmra.mxu0 %vm164_vm0, %v149_v9 }
  0x20   : > { %381 = vmatmul.msk.f32.gmra.mxu1 %vm164_vm0, %v153_v10 }
  0x21   : > { %385 = vmatmul.msk.f32.gmra.mxu2 %vm164_vm0, %v157_v11 }
  0x22   : > { %389 = vmatmul.msk.f32.gmra.mxu3 %vm164_vm0, %v161_v12 }
  0x27   : > { %378 = vmatmul.msk.f32.gmra.mxu0 %vm164_vm0, %v150_v13 }
  0x28   : > { %382 = vmatmul.msk.f32.gmra.mxu1 %vm164_vm0, %v154_v14 }
  0x29   : > { %386 = vmatmul.msk.f32.gmra.mxu2 %vm164_vm0, %v158_v15 }
  0x2a   : > { %390 = vmatmul.msk.f32.gmra.mxu3 %vm164_vm0, %v162_v16 }
  0x8c   : > { %v230_v17 = vpop.f32.mrf.mxu0 }
  0x8d   : > { %v242_v18 = vpop.f32.mrf.mxu1 }
  0x94   : > { %v254_v19 = vpop.f32.mrf.mxu2  ;;  %v233_v21 = vpop.f32.mrf.mxu0 }
  0x95   : > { %v266_v20 = vpop.f32.mrf.mxu3  ;;  %v245_v22 = vpop.f32.mrf.mxu1  ;;  %v396_v23 = vpack.c.bf16 %v233_v21, %v230_v17 }
  0x96   : > { %v406_v24 = vpack.c.bf16 %v245_v22, %v242_v18 }
  0x97   : > { %397 = vst [vmem:[%s145_s21] sm:$0xff] %v396_v23  }
  0x98   : > { %434 = vst [vmem:[%s145_s21 + $0x10] sm:$0xff] %v406_v24  }
  0x9c   : > { %v257_v25 = vpop.f32.mrf.mxu2  ;;  %v236_v29 = vpop.f32.mrf.mxu0 }
  0x9d   : > { %v269_v26 = vpop.f32.mrf.mxu3  ;;  %v416_v27 = vpack.c.bf16 %v257_v25, %v254_v19  ;;  %v248_v30 = vpop.f32.mrf.mxu1 }
  0x9e   : > { %v426_v28 = vpack.c.bf16 %v269_v26, %v266_v20 }
  0x9f   : > { %436 = vst [vmem:[%s145_s21 + $0x20] sm:$0xff] %v416_v27  }
  0xa0   : > { %438 = vst [vmem:[%s145_s21 + $0x30] sm:$0xff] %v426_v28  }
  0xa4   : > { %v260_v31 = vpop.f32.mrf.mxu2  ;;  %v239_v33 = vpop.f32.mrf.mxu0 }
  0xa5   : > { %v272_v32 = vpop.f32.mrf.mxu3  ;;  %v251_v34 = vpop.f32.mrf.mxu1  ;;  %v401_v35 = vpack.c.bf16 %v239_v33, %v236_v29 }
  0xa6   : > { %v411_v36 = vpack.c.bf16 %v251_v34, %v248_v30 }
  0xa7   : > { %433 = vst [vmem:[%s145_s21 + $0x8] sm:$0xff] %v401_v35  }
  0xa8   : > { %435 = vst [vmem:[%s145_s21 + $0x18] sm:$0xff] %v411_v36  }
  0xac   : > { %v263_v37 = vpop.f32.mrf.mxu2 }
  0xad   : > { %v275_v38 = vpop.f32.mrf.mxu3  ;;  %v421_v39 = vpack.c.bf16 %v263_v37, %v260_v31 }
  0xae   : > { %v431_v40 = vpack.c.bf16 %v275_v38, %v272_v32 }
  0xaf   : > { %437 = vst [vmem:[%s145_s21 + $0x28] sm:$0xff] %v421_v39  }
  0xb0   : > { %439 = vst [vmem:[%s145_s21 + $0x38] sm:$0xff] %v431_v40  }
  0xb1 PF: > { %s12_s9 = sadd.s32 1, %s457_s9  }
  0xb2   : > { %p9_p4 = scmp.ge.s32.totalorder %s12_s9, 4  }
  0xb4   :  { %11 = sbr.rel (!%p9_p4) target bundleno = 1 (0x1), region = 58 }

// kernel: gcn_forward.9
= control target key start
LH: loop header
LB: loop body
LE: loop exit
PB: predicated region body
PF: predicated region fallthrough
CT: control target
= control target key end

     0   :  { %8 = vsyncpa [#allocation3], 0  ;;  %s1251_s0 = inlined_call_operand.vmem [shape: bf16[256,128], index: 0, kind: input, shape index: {}]   ;;  %s1252_s1 = inlined_call_operand.vmem [shape: f32[128,128], index: 1, kind: input, shape index: {}]   ;;  %s1253_s2 = inlined_call_operand.vmem [shape: f32[1,128], index: 2, kind: input, shape index: {}]   ;;  %s1254_s3 = inlined_call_operand.hbm [shape: f32[256,128], index: 3, kind: output, shape index: {}]  }
   0x1   :  { %10 = vsyncpa [#allocation3 + $0x1], 0  ;;  %s870_s12 = smov 0   ;;  %s872_s13 = smov 0  }
   0x2   :  { %s874_s14 = smov 0   ;;  %s876_s15 = smov 0  }
   0x3 LB: > { %s891_s16 = sadd.s32 4294967295, %s846_s15   ;;  %s578_s17 = sadd.s32 4294967294, %s846_s15   ;;  %s846_s15 = sphi %s876_s15, %s1260_s15   ;;  %s842_s14 = sphi %s874_s14, %s1259_s14   ;;  %s838_s13 = sphi %s872_s13, %s1258_s13   ;;  %s834_s12 = sphi %s870_s12, %s1257_s12  }
   0x4   : > { %s895_s18 = sadd.s32 1, %s846_s15   ;;  %s91_s19 = sadd.s32 1, %s842_s14 }
   0x5   : > { %s88_s20 = ssub.s32 %s846_s15, %s895_s18  ;;  %p101_p0 = scmp.ne.s32.totalorder %s842_s14, %s838_s13 }
   0x6   : > { %p89_p1 = scmp.eq.s32.totalorder %s88_s20, 0  ;;  %p102_p2 = scmp.eq.s32.totalorder %s891_s16, 1 }
   0x7   : > { %p107_p3 = scmp.ne.s32.totalorder %s838_s13, %s834_s12  ;;  %p108_p4 = scmp.eq.s32.totalorder %s578_s17, 1 }
   0x8   : > { %s906_s21 = scalar_select %p89_p1, %s842_s14, %s91_s19  }
   0x9   : > { %p908_p5 = por %p102_p2, %p101_p0  ;;  %p912_p6 = por %p108_p4, %p107_p3 }
   0xa   : > { %p581_p7 = scmp.ge.s32.totalorder %s846_s15, 1  ;;  %p141_p8 = scmp.lt.s32.totalorder %s846_s15, 3 }
   0xc   : > { %p142_p9 = pnand %p581_p7, %p141_p8 }
   0xd   : > { %s583_s9 = sshll.u32 (!%p142_p9), %s891_s16, 4  ;;  %s162_s27 = sand.u32 (!%p142_p9), 1, %s838_s13  }
   0xe   : > { %145 = sbr.rel (%p142_p9) target bundleno = 488 (0x1e8), region = 32  ;;  %p166_p10 = scmp.lt.s32.totalorder (!%p142_p9), %s583_s9, 31 }
   0xf   : > { %s582_s28 = sshll.u32 (!%p142_p9), %s162_s27, 7  ;;  %s590_s30 = sshll.u32 (!%p142_p9), %s891_s16, 7 }
  0x10   : > { %s512_s6 = scalar_lea.hbm (!%p142_p9), %s1254_s3, %s590_s30  ;;  %s501_s8 = scalar_lea.sflag (!%p142_p9), [#allocation3], %s162_s27 }
  0x11   : > { %s515_s7 = sshll.u32 (!%p142_p9), %s512_s6, 4  ;;  %s804_s19 = scalar_lea.hbm (!%p142_p9), %s1254_s3, 256  ;;  %s516_s7 = int_to_ptr.hbm [resolvable:$true] %s515_s7 }
  0x13   : > { %v219_v0 = vld [vmem:[%s1252_s1 + $0x78] sm:$0xff]  ;;  %v218_v1 = vld [vmem:[%s1252_s1 + $0x70] sm:$0xff]  ;;  %v217_v2 = vld [vmem:[%s1252_s1 + $0x68] sm:$0xff]  ;;  %s1262_s9 = smov (!%p166_p10, %s583_s9), 31  ;;  %v289_v40 = vlaneseq }
  0x14   : > { %224 = vmatpush.msra.mxu0 %v219_v0  ;;  %630 = vmatpush.msra.mxu1 %v219_v0  ;;  %v216_v3 = vld [vmem:[%s1252_s1 + $0x60] sm:$0xff]  ;;  %v215_v4 = vld [vmem:[%s1252_s1 + $0x58] sm:$0xff]  ;;  %v214_v5 = vld [vmem:[%s1252_s1 + $0x50] sm:$0xff]  ;;  %s584_s29 = sshll.u32 %s1262_s9, 2 }
  0x15   : > { %631 = vmatpush.msra.mxu2 %v219_v0  ;;  %632 = vmatpush.msra.mxu3 %v219_v0  ;;  %v213_v6 = vld [vmem:[%s1252_s1 + $0x48] sm:$0xff]  ;;  %v212_v7 = vld [vmem:[%s1252_s1 + $0x40] sm:$0xff]  ;;  %v211_v8 = vld [vmem:[%s1252_s1 + $0x38] sm:$0xff]  ;;  %s961_s10 = scalar_lea.vmem %s1251_s0, %s584_s29  ;;  %v980_v41 = vand.u32 127, %v289_v40  ;;  %s1185_s29 = scalar_lea.vmem [#allocation2], %s582_s28 }
  0x16   : > { %225 = vmatpush.msra.mxu0 %v218_v1  ;;  %633 = vmatpush.msra.mxu1 %v218_v1  ;;  %v210_v9 = vld [vmem:[%s1252_s1 + $0x30] sm:$0xff]  ;;  %v209_v10 = vld [vmem:[%s1252_s1 + $0x28] sm:$0xff]  ;;  %v208_v11 = vld [vmem:[%s1252_s1 + $0x20] sm:$0xff]  ;;  %s513_s16 = sshll.u32 %s1185_s29, 4  ;;  %s514_s16 = int_to_ptr.vmem [resolvable:$true] %s513_s16 }
  0x17   : > { %634 = vmatpush.msra.mxu2 %v218_v1  ;;  %635 = vmatpush.msra.mxu3 %v218_v1  ;;  %v207_v12 = vld [vmem:[%s1252_s1 + $0x18] sm:$0xff]  ;;  %v206_v13 = vld [vmem:[%s1252_s1 + $0x10] sm:$0xff]  ;;  %v592_v14 = vld [vmem:[%s961_s10] sm:$0xff]   ;;  %vm291_vm0 = vcmp.lt.s32.totalorder %v980_v41, 4 }
  0x18   : > { %226 = vmatpush.msra.mxu0 %v217_v2  ;;  %636 = vmatpush.msra.mxu1 %v217_v2  ;;  %v205_v15 = vld [vmem:[%s1252_s1 + $0x8] sm:$0xff]  ;;  %v624_v16 = vld [vmem:[%s961_s10 + $0x10] sm:$0xff]   ;;  %v626_v17 = vld [vmem:[%s961_s10 + $0x20] sm:$0xff]   ;;  %v593_v19 = vunpack.c.l.bf16 %v592_v14  ;;  %v594_v24 = vunpack.c.h.bf16 %v592_v14 }
  0x19   : > { %637 = vmatpush.msra.mxu2 %v217_v2  ;;  %638 = vmatpush.msra.mxu3 %v217_v2  ;;  %v204_v18 = vld [vmem:[%s1252_s1] sm:$0xff]  ;;  %v628_v20 = vld [vmem:[%s961_s10 + $0x30] sm:$0xff]   ;;  %v601_v21 = vunpack.c.l.bf16 %v624_v16  ;;  %v609_v22 = vunpack.c.l.bf16 %v626_v17  ;;  %v610_v25 = vunpack.c.h.bf16 %v626_v17  ;;  %v602_v26 = vunpack.c.h.bf16 %v624_v16  ;;  %v623_v28 = vld [vmem:[%s961_s10 + $0x8] sm:$0xff]  }
  0x1a   : > { %227 = vmatpush.msra.mxu0 %v216_v3  ;;  %639 = vmatpush.msra.mxu1 %v216_v3  ;;  %v617_v23 = vunpack.c.l.bf16 %v628_v20  ;;  %v618_v27 = vunpack.c.h.bf16 %v628_v20  ;;  %v627_v29 = vld [vmem:[%s961_s10 + $0x28] sm:$0xff]   ;;  %v625_v30 = vld [vmem:[%s961_s10 + $0x18] sm:$0xff]   ;;  %v597_v31 = vunpack.c.l.bf16 %v623_v28  ;;  %v598_v36 = vunpack.c.h.bf16 %v623_v28  ;;  %v985_v42 = vld [vmem:[%s1253_s2] ss:$0 sm:$0xff] }
  0x1b   : > { %640 = vmatpush.msra.mxu2 %v216_v3  ;;  %641 = vmatpush.msra.mxu3 %v216_v3  ;;  %v629_v32 = vld [vmem:[%s961_s10 + $0x38] sm:$0xff]   ;;  %v613_v33 = vunpack.c.l.bf16 %v627_v29  ;;  %v605_v34 = vunpack.c.l.bf16 %v625_v30  ;;  %v614_v37 = vunpack.c.h.bf16 %v627_v29  ;;  %v606_v38 = vunpack.c.h.bf16 %v625_v30  ;;  %s798_s10 = sshra.s32 %s516_s7, 4  ;;  %s799_s10 = int_to_ptr.hbm [resolvable:$true] %s798_s10 }
  0x1c   : > { %228 = vmatpush.msra.mxu0 %v215_v4  ;;  %642 = vmatpush.msra.mxu1 %v215_v4  ;;  %v621_v35 = vunpack.c.l.bf16 %v629_v32  ;;  %v622_v39 = vunpack.c.h.bf16 %v629_v32  ;;  %s800_s9 = scalar_lea.hbm %s799_s10, 128  ;;  %p805_p0 = scmp.lt.s32.totalorder %s799_s10, %s1254_s3 }
  0x1d   : > { %643 = vmatpush.msra.mxu2 %v215_v4  ;;  %644 = vmatpush.msra.mxu3 %v215_v4  ;;  %p801_p11 = scmp.ne.s32.totalorder %s799_s10, %s800_s9  ;;  %p806_p1 = scmp.lt.s32.totalorder %s804_s19, %s800_s9 }
  0x1e   : > { %229 = vmatpush.msra.mxu0 %v214_v5  ;;  %645 = vmatpush.msra.mxu1 %v214_v5 }
  0x1f   : > { %646 = vmatpush.msra.mxu2 %v214_v5  ;;  %647 = vmatpush.msra.mxu3 %v214_v5  ;;  %p802_p12 = pnand %p801_p11, %p908_p5  ;;  %p807_p2 = por %p806_p1, %p805_p0 }
  0x20   : > { %230 = vmatpush.msra.mxu0 %v213_v6  ;;  %648 = vmatpush.msra.mxu1 %v213_v6 }
  0x21   : > { %649 = vmatpush.msra.mxu2 %v213_v6  ;;  %650 = vmatpush.msra.mxu3 %v213_v6  ;;  %p803_p13 = pneg %p802_p12 }
  0x22   : > { %231 = vmatpush.msra.mxu0 %v212_v7  ;;  %651 = vmatpush.msra.mxu1 %v212_v7 }
  0x23   : > { %652 = vmatpush.msra.mxu2 %v212_v7  ;;  %653 = vmatpush.msra.mxu3 %v212_v7  ;;  %p808_p3 = pnand %p807_p2, %p803_p13 }
  0x24   : > { %232 = vmatpush.msra.mxu0 %v211_v8  ;;  %654 = vmatpush.msra.mxu1 %v211_v8 }
  0x25   : > { %655 = vmatpush.msra.mxu2 %v211_v8  ;;  %656 = vmatpush.msra.mxu3 %v211_v8 }
  0x26   : > { %233 = vmatpush.msra.mxu0 %v210_v9  ;;  %657 = vmatpush.msra.mxu1 %v210_v9 }
  0x27   : > { %658 = vmatpush.msra.mxu2 %v210_v9  ;;  %659 = vmatpush.msra.mxu3 %v210_v9 }
  0x28   : > { %234 = vmatpush.msra.mxu0 %v209_v10  ;;  %660 = vmatpush.msra.mxu1 %v209_v10 }
  0x29   : > { %661 = vmatpush.msra.mxu2 %v209_v10  ;;  %662 = vmatpush.msra.mxu3 %v209_v10 }
  0x2a   : > { %235 = vmatpush.msra.mxu0 %v208_v11  ;;  %663 = vmatpush.msra.mxu1 %v208_v11 }
  0x2b   : > { %664 = vmatpush.msra.mxu2 %v208_v11  ;;  %665 = vmatpush.msra.mxu3 %v208_v11 }
  0x2c   : > { %236 = vmatpush.msra.mxu0 %v207_v12  ;;  %666 = vmatpush.msra.mxu1 %v207_v12 }
  0x2d   : > { %667 = vmatpush.msra.mxu2 %v207_v12  ;;  %668 = vmatpush.msra.mxu3 %v207_v12 }
  0x2e   : > { %237 = vmatpush.msra.mxu0 %v206_v13  ;;  %669 = vmatpush.msra.mxu1 %v206_v13 }
  0x2f   : > { %670 = vmatpush.msra.mxu2 %v206_v13  ;;  %671 = vmatpush.msra.mxu3 %v206_v13 }
  0x30   : > { %238 = vmatpush.msra.mxu0 %v205_v15  ;;  %672 = vmatpush.msra.mxu1 %v205_v15 }
  0x31   : > { %673 = vmatpush.msra.mxu2 %v205_v15  ;;  %674 = vmatpush.msra.mxu3 %v205_v15 }
  0x32   : > { %239 = vmatpush.msra.mxu0 %v204_v18  ;;  %675 = vmatpush.msra.mxu1 %v204_v18 }
  0x33   : > { %676 = vmatpush.msra.mxu2 %v204_v18  ;;  %240 = vmatmul.f32.vlgmr.msra.gmra.mxu0 %v593_v19 }
  0x34   : > { %252 = vmatmul.f32.vlgmr.msra.gmra.mxu1 %v601_v21  ;;  %264 = vmatmul.f32.vlgmr.msra.gmra.mxu2 %v609_v22 }
  0x35   : > { %677 = vmatpush.msra.mxu3 %v204_v18 }
  0x36   : > { %276 = vmatmul.f32.vlgmr.msra.gmra.mxu3 %v617_v23 }
  0x3b   : > { %243 = vmatmul.f32.gmra.mxu0 %v594_v24 }
  0x3c   : > { %267 = vmatmul.f32.gmra.mxu2 %v610_v25  ;;  %255 = vmatmul.f32.gmra.mxu1 %v602_v26 }
  0x3e   : > { %279 = vmatmul.f32.gmra.mxu3 %v618_v27 }
  0x43   : > { %246 = vmatmul.f32.gmra.mxu0 %v597_v31 }
  0x44   : > { %270 = vmatmul.f32.gmra.mxu2 %v613_v33  ;;  %258 = vmatmul.f32.gmra.mxu1 %v605_v34 }
  0x46   : > { %282 = vmatmul.f32.gmra.mxu3 %v621_v35 }
  0x4b   : > { %249 = vmatmul.f32.gmra.mxu0 %v598_v36 }
  0x4c   : > { %273 = vmatmul.f32.gmra.mxu2 %v614_v37  ;;  %261 = vmatmul.f32.gmra.mxu1 %v606_v38 }
  0x4e   : > { %285 = vmatmul.f32.gmra.mxu3 %v622_v39 }
  0xb0   : > { %v241_v43 = vpop.f32.mrf.mxu0 }
  0xb1   : > { %v989_v44 = vadd.f32 %v985_v42, %v241_v43  ;;  %v253_v45 = vpop.f32.mrf.mxu1 }
  0xb2   : > { %v992_v46 = vadd.f32 %v985_v42, %v253_v45 }
  0xb3   : > { %v292_v47 = vsel %vm291_vm0, %v989_v44, -inf }
  0xb4   : > { %v296_v48 = vsel %vm291_vm0, %v992_v46, -inf  ;;  %308 = vmax.xlane.f32.xlu0 %v292_v47 }
  0xb5   : > { %316 = vmax.xlane.f32.xlu2 %v296_v48 }
  0xb7   : > { %v265_v49 = vpop.f32.mrf.mxu2 }
  0xb8   : > { %v1001_v50 = vadd.f32 %v985_v42, %v265_v49  ;;  %v244_v51 = vpop.f32.mrf.mxu0 }
  0xb9   : > { %v277_v52 = vpop.f32.mrf.mxu3  ;;  %v256_v55 = vpop.f32.mrf.mxu1  ;;  %v1016_v59 = vadd.f32 %v985_v42, %v244_v51 }
  0xba   : > { %v1004_v53 = vadd.f32 %v985_v42, %v277_v52  ;;  %v300_v54 = vsel %vm291_vm0, %v1001_v50, -inf  ;;  %v1013_v57 = vadd.f32 %v985_v42, %v256_v55 }
  0xbb   : > { %v293_v1 = vsel %vm291_vm0, %v1016_v59, -inf }
  0xbc   : > { %v304_v56 = vsel %vm291_vm0, %v1004_v53, -inf  ;;  %v297_v63 = vsel %vm291_vm0, %v1013_v57, -inf }
  0xbd   : > { %324 = vmax.xlane.f32.xlu2 %v300_v54  ;;  %332 = vmax.xlane.f32.xlu0 %v304_v56 }
  0xbf   : > { %v268_v58 = vpop.f32.mrf.mxu2 }
  0xc0   : > { %v247_v60 = vpop.f32.mrf.mxu0  ;;  %v1031_v3 = vadd.f32 %v985_v42, %v268_v58 }
  0xc1   : > { %v1019_v61 = vadd.f32 %v985_v42, %v247_v60  ;;  %v280_v62 = vpop.f32.mrf.mxu3  ;;  %v259_v5 = vpop.f32.mrf.mxu1 }
  0xc2   : > { %v301_v9 = vsel %vm291_vm0, %v1031_v3, -inf  ;;  %v1046_v11 = vadd.f32 %v985_v42, %v259_v5  ;;  %v1079_v25 = vadd.f32 %v985_v42, %v280_v62 }
  0xc3   : > { %v294_v0 = vsel %vm291_vm0, %v1019_v61, -inf }
  0xc4   : > { %312 = vmax.xlane.f32.xlu1 %v294_v0  ;;  %v298_v16 = vsel %vm291_vm0, %v1046_v11, -inf  ;;  %v305_v26 = vsel %vm291_vm0, %v1079_v25, -inf }
  0xc5   : > { %318 = vmax.xlane.f32.xlu2 %v297_v63  ;;  %310 = vmax.xlane.f32.xlu0 %v293_v1 }
  0xc7   : > { %v271_v2 = vpop.f32.mrf.mxu2 }
  0xc8   : > { %v1034_v4 = vadd.f32 %v985_v42, %v271_v2  ;;  %v250_v8 = vpop.f32.mrf.mxu0 }
  0xc9   : > { %v283_v6 = vpop.f32.mrf.mxu3  ;;  %v1043_v10 = vadd.f32 %v985_v42, %v250_v8  ;;  %v262_v17 = vpop.f32.mrf.mxu1 }
  0xca   : > { %v302_v7 = vsel %vm291_vm0, %v1034_v4, -inf  ;;  %v1061_v19 = vadd.f32 %v985_v42, %v283_v6  ;;  %v1064_v20 = vadd.f32 %v985_v42, %v262_v17 }
  0xcb   : > { %v295_v14 = vsel %vm291_vm0, %v1043_v10, -inf }
  0xcc   : > { %328 = vmax.xlane.f32.xlu1 %v302_v7  ;;  %v306_v22 = vsel %vm291_vm0, %v1061_v19, -inf  ;;  %v299_v23 = vsel %vm291_vm0, %v1064_v20, -inf }
  0xcd   : > { %326 = vmax.xlane.f32.xlu0 %v301_v9 }
  0xcf   : > { %v274_v12 = vpop.f32.mrf.mxu2 }
  0xd0   : > { %v1049_v13 = vadd.f32 %v985_v42, %v274_v12 }
  0xd1   : > { %v286_v18 = vpop.f32.mrf.mxu3 }
  0xd2   : > { %v303_v15 = vsel %vm291_vm0, %v1049_v13, -inf  ;;  %v1067_v21 = vadd.f32 %v985_v42, %v286_v18 }
  0xd3   : > { %330 = vmax.xlane.f32.xlu2 %v303_v15 }
  0xd4   : > { %314 = vmax.xlane.f32.xlu1 %v295_v14  ;;  %v307_v24 = vsel %vm291_vm0, %v1067_v21, -inf }
  0xd5   : > { %320 = vmax.xlane.f32.xlu0 %v298_v16 }
  0xdb   : > { %336 = vmax.xlane.f32.xlu2 %v306_v22 }
  0xdc   : > { %322 = vmax.xlane.f32.xlu1 %v299_v23 }
  0xdd   : > { %338 = vmax.xlane.f32.xlu0 %v307_v24 }
  0xe4   : > { %334 = vmax.xlane.f32.xlu1 %v305_v26 }
 0x127   : > { %v309_v27 = vpop.xlane.xlu0 %308 }
 0x128   : > { %v317_v28 = vpop.xlane.xlu2 %316  ;;  %v1085_v29 = vsub.f32 %v989_v44, %v309_v27 }
 0x129   : > { %v1088_v30 = vsub.f32 %v992_v46, %v317_v28 }
 0x12a   : > { %v356_v31 = vmul.f32 1.442695, %v1085_v29 }
 0x12b   : > { %v364_v32 = vmul.f32 1.442695, %v1088_v30 }
 0x12c   : > { %720 = vpow2.f32 %v356_v31 }
 0x12d   : > { %722 = vpow2.f32 %v364_v32 }
 0x130   : > { %v325_v33 = vpop.xlane.xlu2 %324  ;;  %v333_v34 = vpop.xlane.xlu0 %332 }
 0x131   : > { %v1093_v35 = vsub.f32 %v1001_v50, %v325_v33  ;;  %v1096_v36 = vsub.f32 %v1004_v53, %v333_v34 }
 0x132   : > { %v721_v37 = vpop.eup %720 }
 0x133   : > { %v723_v38 = vpop.eup %722  ;;  %v372_v39 = vmul.f32 1.442695, %v1093_v35  ;;  %v380_v40 = vmul.f32 1.442695, %v1096_v36  ;;  %v388_v42 = vsel %vm291_vm0, %v721_v37, 0.0 }
 0x134   : > { %v392_v43 = vsel %vm291_vm0, %v723_v38, 0.0  ;;  %404 = vadd.xlane.f32.xlu1 %v388_v42 }
 0x135   : > { %724 = vpow2.f32 %v372_v39  ;;  %412 = vadd.xlane.f32.xlu2 %v392_v43 }
 0x136   : > { %726 = vpow2.f32 %v380_v40 }
 0x137   : > { %v313_v44 = vpop.xlane.xlu1 %312 }
 0x138   : > { %v319_v45 = vpop.xlane.xlu2 %318  ;;  %v311_v46 = vpop.xlane.xlu0 %310  ;;  %v1112_v51 = vsub.f32 %v1019_v61, %v313_v44 }
 0x139   : > { %v1105_v47 = vsub.f32 %v1013_v57, %v319_v45  ;;  %v1108_v48 = vsub.f32 %v1016_v59, %v311_v46 }
 0x13a   : > { %v360_v56 = vmul.f32 1.442695, %v1112_v51 }
 0x13b   : > { %v725_v49 = vpop.eup %724  ;;  %v366_v50 = vmul.f32 1.442695, %v1105_v47  ;;  %v358_v52 = vmul.f32 1.442695, %v1108_v48 }
 0x13c   : > { %v727_v53 = vpop.eup %726  ;;  %v396_v54 = vsel %vm291_vm0, %v725_v49, 0.0 }
 0x13d   : > { %728 = vpow2.f32 %v366_v50  ;;  %420 = vadd.xlane.f32.xlu0 %v396_v54  ;;  %v400_v55 = vsel %vm291_vm0, %v727_v53, 0.0 }
 0x13e   : > { %730 = vpow2.f32 %v358_v52  ;;  %428 = vadd.xlane.f32.xlu1 %v400_v55 }
 0x13f   : > { %v329_v57 = vpop.xlane.xlu1 %328  ;;  %732 = vpow2.f32 %v360_v56 }
 0x140   : > { %v1121_v58 = vsub.f32 %v1034_v4, %v329_v57  ;;  %v327_v59 = vpop.xlane.xlu0 %326 }
 0x141   : > { %v1124_v60 = vsub.f32 %v1031_v3, %v327_v59 }
 0x142   : > { %v376_v61 = vmul.f32 1.442695, %v1121_v58 }
 0x143   : > { %v729_v62 = vpop.eup %728  ;;  %v374_v63 = vmul.f32 1.442695, %v1124_v60 }
 0x144   : > { %v731_v0 = vpop.eup %730  ;;  %734 = vpow2.f32 %v376_v61  ;;  %v393_v1 = vsel %vm291_vm0, %v729_v62, 0.0 }
 0x145   : > { %736 = vpow2.f32 %v374_v63  ;;  %414 = vadd.xlane.f32.xlu0 %v393_v1  ;;  %v389_v2 = vsel %vm291_vm0, %v731_v0, 0.0  ;;  %v733_v7 = vpop.eup %732 }
 0x146   : > { %406 = vadd.xlane.f32.xlu2 %v389_v2  ;;  %v331_v4 = vpop.xlane.xlu2 %330  ;;  %v390_v17 = vsel %vm291_vm0, %v733_v7, 0.0 }
 0x147   : > { %v1133_v3 = vsub.f32 %v1049_v13, %v331_v4  ;;  %v315_v5 = vpop.xlane.xlu1 %314 }
 0x148   : > { %v321_v6 = vpop.xlane.xlu0 %320  ;;  %v1140_v14 = vsub.f32 %v1043_v10, %v315_v5 }
 0x149   : > { %v378_v8 = vmul.f32 1.442695, %v1133_v3  ;;  %v1137_v9 = vsub.f32 %v1046_v11, %v321_v6 }
 0x14a   : > { %v735_v12 = vpop.eup %734  ;;  %v362_v11 = vmul.f32 1.442695, %v1140_v14 }
 0x14b   : > { %v737_v15 = vpop.eup %736  ;;  %738 = vpow2.f32 %v378_v8  ;;  %v368_v16 = vmul.f32 1.442695, %v1137_v9  ;;  %v398_v13 = vsel %vm291_vm0, %v735_v12, 0.0 }
 0x14c   : > { %v397_v18 = vsel %vm291_vm0, %v737_v15, 0.0 }
 0x14d   : > { %740 = vpow2.f32 %v368_v16  ;;  %408 = vadd.xlane.f32.xlu0 %v390_v17  ;;  %422 = vadd.xlane.f32.xlu1 %v397_v18 }
 0x14e   : > { %424 = vadd.xlane.f32.xlu2 %v398_v13  ;;  %v337_v10 = vpop.xlane.xlu2 %336  ;;  %742 = vpow2.f32 %v362_v11 }
 0x14f   : > { %v1151_v22 = vsub.f32 %v1061_v19, %v337_v10  ;;  %v323_v23 = vpop.xlane.xlu1 %322 }
 0x150   : > { %v1154_v24 = vsub.f32 %v1064_v20, %v323_v23  ;;  %v339_v26 = vpop.xlane.xlu0 %338 }
 0x151   : > { %v739_v27 = vpop.eup %738  ;;  %v384_v28 = vmul.f32 1.442695, %v1151_v22  ;;  %v1159_v33 = vsub.f32 %v1067_v21, %v339_v26 }
 0x152   : > { %v370_v31 = vmul.f32 1.442695, %v1154_v24  ;;  %v399_v19 = vsel %vm291_vm0, %v739_v27, 0.0 }
 0x153   : > { %v741_v32 = vpop.eup %740  ;;  %744 = vpow2.f32 %v384_v28  ;;  %v386_v34 = vmul.f32 1.442695, %v1159_v33 }
 0x154   : > { %746 = vpow2.f32 %v370_v31  ;;  %v394_v20 = vsel %vm291_vm0, %v741_v32, 0.0  ;;  %v743_v38 = vpop.eup %742 }
 0x155   : > { %426 = vadd.xlane.f32.xlu0 %v399_v19  ;;  %416 = vadd.xlane.f32.xlu1 %v394_v20  ;;  %748 = vpow2.f32 %v386_v34  ;;  %v391_v45 = vsel %vm291_vm0, %v743_v38, 0.0 }
 0x157   : > { %v335_v37 = vpop.xlane.xlu1 %334 }
 0x158   : > { %v1167_v39 = vsub.f32 %v1079_v25, %v335_v37 }
 0x159   : > { %v745_v40 = vpop.eup %744 }
 0x15a   : > { %v747_v42 = vpop.eup %746  ;;  %v382_v21 = vmul.f32 1.442695, %v1167_v39  ;;  %v402_v44 = vsel %vm291_vm0, %v745_v40, 0.0 }
 0x15b   : > { %v395_v43 = vsel %vm291_vm0, %v747_v42, 0.0  ;;  %v749_v25 = vpop.eup %748 }
 0x15c   : > { %750 = vpow2.f32 %v382_v21  ;;  %418 = vadd.xlane.f32.xlu2 %v395_v43  ;;  %v403_v50 = vsel %vm291_vm0, %v749_v25, 0.0 }
 0x15d   : > { %432 = vadd.xlane.f32.xlu0 %v402_v44  ;;  %410 = vadd.xlane.f32.xlu1 %v391_v45 }
 0x162   : > { %v751_v46 = vpop.eup %750 }
 0x163   : > { %v401_v49 = vsel %vm291_vm0, %v751_v46, 0.0 }
 0x164   : > { %430 = vadd.xlane.f32.xlu2 %v401_v49 }
 0x165   : > { %434 = vadd.xlane.f32.xlu1 %v403_v50 }
 0x1a7   : > { %v405_v52 = vpop.xlane.xlu1 %404 }
 0x1a8   : > { %v413_v53 = vpop.xlane.xlu2 %412  ;;  %752 = vlog2.f32 %v405_v52 }
 0x1a9   : > { %754 = vlog2.f32 %v413_v53 }
 0x1ae   : > { %v753_v54 = vpop.eup %752 }
 0x1af   : > { %v755_v55 = vpop.eup %754  ;;  %v437_v56 = vmul.f32 0.6931472, %v753_v54 }
 0x1b0   : > { %v445_v57 = vmul.f32 0.6931472, %v755_v55  ;;  %v421_v59 = vpop.xlane.xlu0 %420 }
 0x1b1   : > { %v468_v61 = vsub.f32 %v1085_v29, %v437_v56  ;;  %v429_v62 = vpop.xlane.xlu1 %428  ;;  %756 = vlog2.f32 %v421_v59 }
 0x1b2   : > { %v472_v41 = vsub.f32 %v1088_v30, %v445_v57  ;;  %758 = vlog2.f32 %v429_v62 }
 0x1b3   : > { %484 = vst [vmem:[%s1185_s29] sm:$0xff] %v468_v61 }
 0x1b4   : > { %488 = vst [vmem:[%s1185_s29 + $0x20] sm:$0xff] %v472_v41 }
 0x1b7   : > { %v757_v63 = vpop.eup %756 }
 0x1b8   : > { %v759_v0 = vpop.eup %758  ;;  %v453_v1 = vmul.f32 0.6931472, %v757_v63  ;;  %v415_v2 = vpop.xlane.xlu0 %414 }
 0x1b9   : > { %v461_v4 = vmul.f32 0.6931472, %v759_v0  ;;  %v407_v5 = vpop.xlane.xlu2 %406  ;;  %760 = vlog2.f32 %v415_v2 }
 0x1ba   : > { %v476_v29 = vsub.f32 %v1093_v35, %v453_v1  ;;  %762 = vlog2.f32 %v407_v5 }
 0x1bb   : > { %v480_v30 = vsub.f32 %v1096_v36, %v461_v4 }
 0x1bc   : > { %492 = vst [vmem:[%s1185_s29 + $0x40] sm:$0xff] %v476_v29 }
 0x1bd   : > { %496 = vst [vmem:[%s1185_s29 + $0x60] sm:$0xff] %v480_v30 }
 0x1bf   : > { %v761_v6 = vpop.eup %760 }
 0x1c0   : > { %v763_v7 = vpop.eup %762  ;;  %v447_v8 = vmul.f32 0.6931472, %v761_v6  ;;  %v423_v12 = vpop.xlane.xlu1 %422 }
 0x1c1   : > { %v409_v15 = vpop.xlane.xlu0 %408  ;;  %v439_v16 = vmul.f32 0.6931472, %v763_v7  ;;  %v425_v13 = vpop.xlane.xlu2 %424  ;;  %764 = vlog2.f32 %v423_v12 }
 0x1c2   : > { %v473_v17 = vsub.f32 %v1105_v47, %v447_v8  ;;  %766 = vlog2.f32 %v425_v13 }
 0x1c3   : > { %v469_v35 = vsub.f32 %v1108_v48, %v439_v16  ;;  %768 = vlog2.f32 %v409_v15 }
 0x1c4   : > { %489 = vst [vmem:[%s1185_s29 + $0x28] sm:$0xff] %v473_v17 }
 0x1c5   : > { %485 = vst [vmem:[%s1185_s29 + $0x8] sm:$0xff] %v469_v35 }
 0x1c7   : > { %v765_v36 = vpop.eup %764 }
 0x1c8   : > { %v767_v18 = vpop.eup %766  ;;  %v455_v11 = vmul.f32 0.6931472, %v765_v36  ;;  %v417_v10 = vpop.xlane.xlu1 %416 }
 0x1c9   : > { %v427_v23 = vpop.xlane.xlu0 %426  ;;  %v769_v26 = vpop.eup %768  ;;  %v457_v27 = vmul.f32 0.6931472, %v767_v18  ;;  %770 = vlog2.f32 %v417_v10 }
 0x1ca   : > { %v477_v28 = vsub.f32 %v1124_v60, %v455_v11  ;;  %v441_v47 = vmul.f32 0.6931472, %v769_v26  ;;  %772 = vlog2.f32 %v427_v23 }
 0x1cb   : > { %v478_v48 = vsub.f32 %v1121_v58, %v457_v27 }
 0x1cc   : > { %493 = vst [vmem:[%s1185_s29 + $0x48] sm:$0xff] %v477_v28  ;;  %v470_v31 = vsub.f32 %v1112_v51, %v441_v47 }
 0x1cd   : > { %494 = vst [vmem:[%s1185_s29 + $0x50] sm:$0xff] %v478_v48 }
 0x1ce   : > { %486 = vst [vmem:[%s1185_s29 + $0x10] sm:$0xff] %v470_v31 }
 0x1cf   : > { %v771_v32 = vpop.eup %770  ;;  %v419_v19 = vpop.xlane.xlu2 %418 }
 0x1d0   : > { %v773_v20 = vpop.eup %772  ;;  %v449_v34 = vmul.f32 0.6931472, %v771_v32  ;;  %774 = vlog2.f32 %v419_v19  ;;  %v411_v37 = vpop.xlane.xlu1 %410 }
 0x1d1   : > { %v433_v38 = vpop.xlane.xlu0 %432  ;;  %v459_v60 = vmul.f32 0.6931472, %v773_v20  ;;  %776 = vlog2.f32 %v411_v37 }
 0x1d2   : > { %v474_v40 = vsub.f32 %v1137_v9, %v449_v34  ;;  %778 = vlog2.f32 %v433_v38 }
 0x1d3   : > { %v479_v58 = vsub.f32 %v1133_v3, %v459_v60 }
 0x1d4   : > { %490 = vst [vmem:[%s1185_s29 + $0x30] sm:$0xff] %v474_v40 }
 0x1d5   : > { %495 = vst [vmem:[%s1185_s29 + $0x58] sm:$0xff] %v479_v58 }
 0x1d6   : > { %v775_v51 = vpop.eup %774 }
 0x1d7   : > { %v777_v42 = vpop.eup %776  ;;  %v451_v21 = vmul.f32 0.6931472, %v775_v51  ;;  %v431_v43 = vpop.xlane.xlu2 %430 }
 0x1d8   : > { %v779_v44 = vpop.eup %778  ;;  %v443_v45 = vmul.f32 0.6931472, %v777_v42  ;;  %780 = vlog2.f32 %v431_v43  ;;  %v435_v25 = vpop.xlane.xlu1 %434 }
 0x1d9   : > { %v475_v9 = vsub.f32 %v1154_v24, %v451_v21  ;;  %v465_v46 = vmul.f32 0.6931472, %v779_v44  ;;  %782 = vlog2.f32 %v435_v25 }
 0x1da   : > { %v471_v3 = vsub.f32 %v1140_v14, %v443_v45 }
 0x1db   : > { %491 = vst [vmem:[%s1185_s29 + $0x38] sm:$0xff] %v475_v9  ;;  %v482_v49 = vsub.f32 %v1151_v22, %v465_v46 }
 0x1dc   : > { %487 = vst [vmem:[%s1185_s29 + $0x18] sm:$0xff] %v471_v3 }
 0x1dd   : > { %498 = vst [vmem:[%s1185_s29 + $0x70] sm:$0xff] %v482_v49 }
 0x1de   : > { %v781_v50 = vpop.eup %780 }
 0x1df   : > { %v783_v24 = vpop.eup %782  ;;  %v463_v52 = vmul.f32 0.6931472, %v781_v50 }
 0x1e0   : > { %v467_v53 = vmul.f32 0.6931472, %v783_v24 }
 0x1e1   : > { %v481_v14 = vsub.f32 %v1167_v39, %v463_v52 }
 0x1e2   : > { %v483_v22 = vsub.f32 %v1159_v33, %v467_v53 }
 0x1e3   : > { %497 = vst [vmem:[%s1185_s29 + $0x68] sm:$0xff] %v481_v14 }
 0x1e4   : > { %499 = vst [vmem:[%s1185_s29 + $0x78] sm:$0xff] %v483_v22 }
 0x1e5   : > { %811 = shalt.err (!%p808_p3)
}
 0x1e6   : > { %s848_s25 = smov 128   ;;  %s849_s26 = smov 8  }
 0x1e7   : > { %678 = dma.vmem_to_hbm [thread:$0]  (%p908_p5), %s514_s16, 2048, %s516_s7, %s501_s8, %s848_s25, %s848_s25, %s849_s26  }
 0x1e8 PF: > { %p684_p4 = scmp.ge.s32.totalorder %s846_s15, 2  ;;  %s530_s27 = sand.u32 1, %s834_s12  }
 0x1e9   : > { %s531_s28 = scalar_lea.sflag [#allocation3], %s530_s27 }
 0x1ea   : > { %p681_p7 = pnand %p684_p4, %p912_p6 }
 0x1ec   : > { %p682_p8 = pneg %p681_p7 }
 0x1ee   : > { %829 = dma.done.wait (%p682_p8), %s531_s28, 2048  }
 0x1ef   : > { %831 = vsyncadd (%p682_p8), %s531_s28, 4294965248  ;;  %p13_p9 = scmp.ge.s32.totalorder %s895_s18, 4   ;;  %s1257_s12 = smov %s838_s13 }
 0x1f0   : > { %s1258_s13 = smov %s842_s14  ;;  %s1259_s14 = smov %s906_s21 }
 0x1f1   : > { %s1260_s15 = smov %s895_s18  ;;  %15 = sbr.rel (!%p13_p9) target bundleno = 3 (0x3), region = 67 }
 0x1f6   :  { %537 = vsyncpa [#allocation3], 1 }
 0x1f7   :  { %539 = vsyncpa [#allocation3 + $0x1], 1 }

// kernel: gcn_forward.6
= control target key start
LH: loop header
LB: loop body
LE: loop exit
PB: predicated region body
PF: predicated region fallthrough
CT: control target
= control target key end

     0   :  { %s1630_s30 = smov [#allocation4]   ;;  %s1631_s8 = smov [#allocation5]   ;;  %s2168_s0 = inlined_call_operand.vmem [shape: s32[2], index: 0, kind: input, shape index: {}]   ;;  %s2169_s2 = inlined_call_operand.vmem [shape: bf16[256,256], index: 2, kind: input, shape index: {}]   ;;  %s2170_s3 = inlined_call_operand.vmem [shape: bf16[256,128], index: 3, kind: input, shape index: {}]   ;;  %s2171_s4 = inlined_call_operand.vmem [shape: f32[1,128], index: 4, kind: input, shape index: {}]   ;;  %s2172_s5 = inlined_call_operand.vmem [shape: f32[1,128], index: 5, kind: input, shape index: {}]   ;;  %s2173_s6 = inlined_call_operand.vmem [shape: f32[1,128], index: 6, kind: input, shape index: {}]   ;;  %s2174_s7 = inlined_call_operand.vmem [shape: bf16[256,128], index: 7, kind: output, shape index: {}]   ;;  %s2175_s1 = inlined_call_operand.vmem [shape: s32[2,2], index: 1, kind: input, shape index: {}]  }
   0x1   :  { %s13_s26 = sshll.u32 %s2168_s0, 4  ;;  %s18_s29 = sshll.u32 %s2175_s1, 4  ;;  %s14_s26 = int_to_ptr.vmem [resolvable:$true] %s13_s26  ;;  %s19_s29 = int_to_ptr.vmem [resolvable:$true] %s18_s29 }
   0x2   :  { %16 = dma.vmem_to_smem %s14_s26, 16, %s1630_s30, [#allocation3] }
   0x3   :  { %21 = dma.vmem_to_smem %s19_s29, 32, %s1631_s8, [#allocation3] }
   0x4   :  { %1600 = dma.done.wait [#allocation3], 48 }
   0x5   :  { %1601 = vsyncadd [#allocation3], 4294967248 }
   0x6   :  { %24 = sfence }
   0x7   :  { %s1679_s9 = smov 0   ;;  %s1681_s10 = smov 0  }
   0x8   :  { %s1683_s11 = smov 0   ;;  %s1685_s0 = smov 0  }
   0x9   :  { %s1687_s12 = smov 0   ;;  %s1689_s1 = smov 0  }
   0xa   :  { %s1691_s13 = smov 0  }
   0xb LB: > { %s39_s14 = sadd.s32 1, %s1620_s12  ;;  %s42_s15 = sadd.s32 1, %s1624_s1  ;;  %s1628_s13 = sphi %s1691_s13, %s30_s13   ;;  %s1624_s1 = sphi %s1689_s1, %s2185_s1   ;;  %s1620_s12 = sphi %s1687_s12, %s2184_s12   ;;  %s1616_s0 = sphi %s1685_s0, %s2183_s0   ;;  %s1612_s11 = sphi %s1683_s11, %s2182_s11   ;;  %s1608_s10 = sphi %s1681_s10, %s2181_s10   ;;  %s1604_s9 = sphi %s1679_s9, %s2180_s9  }
   0xc   : > { %p40_p0 = scmp.ge.s32.totalorder %s39_s14, 2  ;;  %s46_s16 = sshra.s32 %s1620_s12, 7 }
   0xd   : > { %s48_s17 = sadd.s32 %s1624_s1, %s46_s16  ;;  %s51_s18 = sand.u32 127, %s1620_s12 }
   0xe   : > { %s2187_s14 = smov (%p40_p0, %s39_s14), 0  ;;  %s2189_s15 = smov (!%p40_p0, %s42_s15), %s1624_s1 }
   0xf   : > { %s1279_s19 = sshll.u32 %s48_s17, 7  ;;  %p44_p1 = scmp.ge.s32.totalorder %s2189_s15, 2 }
  0x10   : > { %s52_s20 = sadd.s32 %s1279_s19, %s51_s18  ;;  %s54_s21 = sshra.s32 %s2187_s14, 7 }
  0x11   : > { %s2191_s15 = smov (%p44_p1, %s2189_s15), 0  ;;  %s59_s22 = sand.u32 127, %s2187_s14 }
  0x12   : > { %p74_p2 = scmp.ne.s32.totalorder %s1608_s10, %s1604_s9  ;;  %s53_s23 = sld [smem:[#allocation5 + %s52_s20]] }
  0x13   : > { %s56_s24 = sadd.s32 %s54_s21, %s2191_s15  ;;  %p75_p3 = scmp.eq.s32.totalorder %s1628_s13, 0 }
  0x14   : > { %s1280_s25 = sshll.u32 %s56_s24, 7  ;;  %s62_s28 = ssub.s32 %s1624_s1, %s2191_s15 }
  0x15   : > { %s60_s26 = sadd.s32 %s1280_s25, %s59_s22  ;;  %p76_p4 = por %p75_p3, %p74_p2 }
  0x16   : > { %s61_s27 = sld [smem:[#allocation5 + %s60_s26]]  ;;  %s67_s8 = sadd.s32 1, %s1608_s10 }
  0x17   : > { %p1284_p6 = scmp.ge.s32.totalorder %s1628_s13, 4 }
  0x1c   : > { %s63_s29 = ssub.s32 %s53_s23, %s61_s27  ;;  %240 = sbr.rel (%p1284_p6) target bundleno = 59 (0x3b), region = 28 }
  0x1d   : > { %s64_s30 = sor.u32 %s63_s29, %s62_s28 }
  0x1e   : > { %p65_p5 = scmp.eq.s32.totalorder %s64_s30, 0 }
  0x20   : > { %s1734_s16 = scalar_select %p65_p5, %s1608_s10, %s67_s8  }
  0x21   : > { %243 = sbr.rel (!%p76_p4) target bundleno = 59 (0x3b), region = 32  ;;  %s255_s17 = sld [smem:[#allocation5 + %s52_s20]] (%p76_p4) }
  0x22   : > { %s245_s18 = sand.u32 (%p76_p4), 1, %s1608_s10   ;;  %s1366_s19 = sshll.u32 (%p76_p4), %s1624_s1, 5 }
  0x23   : > { %s1285_s21 = sshll.u32 (%p76_p4), %s245_s18, 6 }
  0x24   : > { %s247_s20 = scalar_lea.vmem (%p76_p4), [#allocation6], %s1285_s21 }
  0x27   : > { %s258_s22 = sadd.s32 %s1366_s19, %s255_s17 }
  0x28   : > { %s1289_s24 = sshll.u32 %s258_s22, 2 }
  0x29   : > { %s1742_s23 = scalar_lea.vmem %s2169_s2, %s1289_s24 }
  0x2a   : > { %v277_v0 = vld [vmem:[%s1742_s23] sm:$0xf]  ;;  %v279_v1 = vld [vmem:[%s1742_s23 + $0x8] sm:$0xf]  ;;  %v281_v2 = vld [vmem:[%s1742_s23 + $0x10] sm:$0xf] }
  0x2b   : > { %278 = vst [vmem:[%s247_s20] sm:$0xf] %v277_v0  ;;  %v283_v3 = vld [vmem:[%s1742_s23 + $0x18] sm:$0xf]  ;;  %v285_v4 = vld [vmem:[%s1742_s23 + $0x20] sm:$0xf] }
  0x2c   : > { %280 = vst [vmem:[%s247_s20 + $0x4] sm:$0xf] %v279_v1  ;;  %v287_v5 = vld [vmem:[%s1742_s23 + $0x28] sm:$0xf]  ;;  %v289_v6 = vld [vmem:[%s1742_s23 + $0x30] sm:$0xf] }
  0x2d   : > { %282 = vst [vmem:[%s247_s20 + $0x8] sm:$0xf] %v281_v2  ;;  %v291_v7 = vld [vmem:[%s1742_s23 + $0x38] sm:$0xf]  ;;  %v293_v8 = vld [vmem:[%s1742_s23 + $0x40] sm:$0xf] }
  0x2e   : > { %284 = vst [vmem:[%s247_s20 + $0xc] sm:$0xf] %v283_v3  ;;  %v295_v9 = vld [vmem:[%s1742_s23 + $0x48] sm:$0xf]  ;;  %v297_v10 = vld [vmem:[%s1742_s23 + $0x50] sm:$0xf] }
  0x2f   : > { %286 = vst [vmem:[%s247_s20 + $0x10] sm:$0xf] %v285_v4  ;;  %v299_v11 = vld [vmem:[%s1742_s23 + $0x58] sm:$0xf]  ;;  %v301_v12 = vld [vmem:[%s1742_s23 + $0x60] sm:$0xf] }
  0x30   : > { %288 = vst [vmem:[%s247_s20 + $0x14] sm:$0xf] %v287_v5  ;;  %v303_v13 = vld [vmem:[%s1742_s23 + $0x68] sm:$0xf]  ;;  %v305_v14 = vld [vmem:[%s1742_s23 + $0x70] sm:$0xf] }
  0x31   : > { %290 = vst [vmem:[%s247_s20 + $0x18] sm:$0xf] %v289_v6  ;;  %v307_v15 = vld [vmem:[%s1742_s23 + $0x78] sm:$0xf] }
  0x32   : > { %292 = vst [vmem:[%s247_s20 + $0x1c] sm:$0xf] %v291_v7 }
  0x33   : > { %294 = vst [vmem:[%s247_s20 + $0x20] sm:$0xf] %v293_v8 }
  0x34   : > { %296 = vst [vmem:[%s247_s20 + $0x24] sm:$0xf] %v295_v9 }
  0x35   : > { %298 = vst [vmem:[%s247_s20 + $0x28] sm:$0xf] %v297_v10 }
  0x36   : > { %300 = vst [vmem:[%s247_s20 + $0x2c] sm:$0xf] %v299_v11 }
  0x37   : > { %302 = vst [vmem:[%s247_s20 + $0x30] sm:$0xf] %v301_v12 }
  0x38   : > { %304 = vst [vmem:[%s247_s20 + $0x34] sm:$0xf] %v303_v13 }
  0x39   : > { %306 = vst [vmem:[%s247_s20 + $0x38] sm:$0xf] %v305_v14 }
  0x3a   : > { %308 = vst [vmem:[%s247_s20 + $0x3c] sm:$0xf] %v307_v15 }
  0x3b PF: > { %p1290_p7 = scmp.ge.s32.totalorder %s1628_s13, 1  ;;  %p388_p8 = scmp.lt.s32.totalorder %s1628_s13, 5 }
  0x3d   : > { %p389_p9 = pnand %p1290_p7, %p388_p8 }
  0x3e   : > { %s395_s27 = sand.u32 (!%p389_p9), 1, %s1604_s9   ;;  %s444_s28 = sshra.s32 (!%p389_p9), %s1612_s11, 7 }
  0x3f   : > { %392 = sbr.rel (%p389_p9) target bundleno = 636 (0x27c), region = 77  ;;  %s1291_s29 = sshll.u32 (!%p389_p9), %s395_s27, 6 }
  0x40   : > { %s446_s30 = sadd.s32 (!%p389_p9), %s1616_s0, %s444_s28  ;;  %s449_s17 = sand.u32 (!%p389_p9), 127, %s1612_s11 }
  0x41   : > { %s1292_s8 = sshll.u32 (!%p389_p9), %s446_s30, 7  ;;  %s1295_s18 = sshll.u32 (!%p389_p9), %s1616_s0, 4 }
  0x42   : > { %s450_s19 = sadd.s32 (!%p389_p9), %s1292_s8, %s449_s17  ;;  %p467_p10 = scmp.lt.s32.totalorder (!%p389_p9), %s1295_s18, 31 }
  0x43   : > { %s451_s21 = sld [smem:[#allocation5 + %s450_s19]] (!%p389_p9)  ;;  %s1777_s30 = scalar_lea.vmem (!%p389_p9), [#allocation6], %s1291_s29 }
  0x44   : > { %s2193_s18 = smov (!%p467_p10, %s1295_s18), 31  ;;  %p1297_p12 = scmp.ne.s32.totalorder %s1612_s11, 0 }
  0x45   : > { %s1296_s22 = sshll.u32 %s2193_s18, 2 }
  0x46   : > { %s1770_s26 = scalar_lea.vmem %s2174_s7, %s1296_s22 }
  0x49   : > { %s1293_s23 = sshll.u32 %s451_s21, 4 }
  0x4a   : > { %p453_p11 = scmp.lt.s32.totalorder %s1293_s23, 31  ;;  %475 = sbr.rel (%p1297_p12) target bundleno = 96 (0x60), region = 85 }
  0x4c   : > { %s2195_s23 = smov (!%p453_p11, %s1293_s23), 31 }
  0x4d   : > { %s1294_s9 = sshll.u32 %s2195_s23, 2 }
  0x4e   : > { %s1775_s28 = scalar_lea.vmem %s2170_s3, %s1294_s9 }
  0x4f   : > { %v1632_v16 = vmov 0.0  }
  0x50   : > { %476 = vst [vmem:[#allocation2 + $0x30] sm:$0xff] %v1632_v16 }
  0x51   : > { %477 = vst [vmem:[#allocation2] sm:$0xff] %v1632_v16 }
  0x52   : > { %478 = vst [vmem:[#allocation2 + $0x58] sm:$0xff] %v1632_v16 }
  0x53   : > { %479 = vst [vmem:[#allocation2 + $0x18] sm:$0xff] %v1632_v16 }
  0x54   : > { %480 = vst [vmem:[#allocation2 + $0x50] sm:$0xff] %v1632_v16 }
  0x55   : > { %481 = vst [vmem:[#allocation2 + $0x68] sm:$0xff] %v1632_v16 }
  0x56   : > { %482 = vst [vmem:[#allocation2 + $0x8] sm:$0xff] %v1632_v16 }
  0x57   : > { %483 = vst [vmem:[#allocation2 + $0x48] sm:$0xff] %v1632_v16 }
  0x58   : > { %484 = vst [vmem:[#allocation2 + $0x40] sm:$0xff] %v1632_v16 }
  0x59   : > { %485 = vst [vmem:[#allocation2 + $0x20] sm:$0xff] %v1632_v16 }
  0x5a   : > { %486 = vst [vmem:[#allocation2 + $0x10] sm:$0xff] %v1632_v16 }
  0x5b   : > { %487 = vst [vmem:[#allocation2 + $0x38] sm:$0xff] %v1632_v16 }
  0x5c   : > { %488 = vst [vmem:[#allocation2 + $0x60] sm:$0xff] %v1632_v16 }
  0x5d   : > { %489 = vst [vmem:[#allocation2 + $0x70] sm:$0xff] %v1632_v16 }
  0x5e   : > { %490 = vst [vmem:[#allocation2 + $0x78] sm:$0xff] %v1632_v16 }
  0x5f   : > { %491 = vst [vmem:[#allocation2 + $0x28] sm:$0xff] %v1632_v16 }
  0x60 PF: > { %s492_s29 = sld [smem:[#allocation4 + %s1616_s0]] }
  0x66   : > { %p1298_p13 = scmp.ge.s32.totalorder %s1612_s11, %s492_s29 }
  0x68   : > { %496 = sbr.rel (%p1298_p13) target bundleno = 302 (0x12e), region = 89 }
  0x6d   : > { %v1382_v17 = vld [vmem:[%s1775_s28 + $0x38] sm:$0xff]  ;;  %v1381_v18 = vld [vmem:[%s1775_s28 + $0x30] sm:$0xff]  ;;  %v1380_v19 = vld [vmem:[%s1775_s28 + $0x28] sm:$0xff] }
  0x6e   : > { %641 = vmatpush.bf16.msra.mxu0 %v1382_v17  ;;  %1430 = vmatpush.bf16.msra.mxu1 %v1382_v17  ;;  %v1379_v20 = vld [vmem:[%s1775_s28 + $0x20] sm:$0xff]  ;;  %v1378_v21 = vld [vmem:[%s1775_s28 + $0x18] sm:$0xff]  ;;  %v1377_v22 = vld [vmem:[%s1775_s28 + $0x10] sm:$0xff] }
  0x6f   : > { %1431 = vmatpush.bf16.msra.mxu2 %v1382_v17  ;;  %1432 = vmatpush.bf16.msra.mxu3 %v1382_v17  ;;  %v1376_v23 = vld [vmem:[%s1775_s28 + $0x8] sm:$0xff]  ;;  %v1375_v24 = vld [vmem:[%s1775_s28] sm:$0xff]  ;;  %v1369_v26 = vld [vmem:[%s1777_s30 + $0x10] sm:$0xff] }
  0x70   : > { %v1367_v25 = vld [vmem:[%s1777_s30] sm:$0xff]  ;;  %v1373_v28 = vld [vmem:[%s1777_s30 + $0x30] sm:$0xff]  ;;  %v1368_v29 = vld [vmem:[%s1777_s30 + $0x8] sm:$0xff] }
  0x71   : > { %v1371_v27 = vld [vmem:[%s1777_s30 + $0x20] sm:$0xff]  ;;  %v1370_v30 = vld [vmem:[%s1777_s30 + $0x18] sm:$0xff]  ;;  %v1372_v31 = vld [vmem:[%s1777_s30 + $0x28] sm:$0xff] }
  0x72   : > { %642 = vmatpush.bf16.msra.mxu0 %v1381_v18  ;;  %1433 = vmatpush.bf16.msra.mxu1 %v1381_v18  ;;  %v1374_v32 = vld [vmem:[%s1777_s30 + $0x38] sm:$0xff]  ;;  %v497_v33 = vld [vmem:[#allocation2 + $0x30] sm:$0xff]  ;;  %v505_v39 = vld [vmem:[#allocation2 + $0x40] sm:$0xff] }
  0x73   : > { %1434 = vmatpush.bf16.msra.mxu2 %v1381_v18  ;;  %1435 = vmatpush.bf16.msra.mxu3 %v1381_v18  ;;  %v501_v34 = vld [vmem:[#allocation2 + $0x50] sm:$0xff]  ;;  %v509_v40 = vld [vmem:[#allocation2 + $0x60] sm:$0xff]  ;;  %v502_v42 = vld [vmem:[#allocation2 + $0x68] sm:$0xff] }
  0x74   : > { %v498_v41 = vld [vmem:[#allocation2] sm:$0xff]  ;;  %v510_v52 = vld [vmem:[#allocation2 + $0x70] sm:$0xff]  ;;  %v499_v53 = vld [vmem:[#allocation2 + $0x58] sm:$0xff] }
  0x75   : > { %v506_v51 = vld [vmem:[#allocation2 + $0x20] sm:$0xff]  ;;  %v503_v54 = vld [vmem:[#allocation2 + $0x8] sm:$0xff]  ;;  %v507_v63 = vld [vmem:[#allocation2 + $0x10] sm:$0xff] }
  0x76   : > { %643 = vmatpush.bf16.msra.mxu0 %v1380_v19  ;;  %1436 = vmatpush.bf16.msra.mxu1 %v1380_v19  ;;  %v511_v0 = vld [vmem:[#allocation2 + $0x78] sm:$0xff]  ;;  %v504_v2 = vld [vmem:[#allocation2 + $0x48] sm:$0xff] }
  0x77   : > { %1437 = vmatpush.bf16.msra.mxu2 %v1380_v19  ;;  %1438 = vmatpush.bf16.msra.mxu3 %v1380_v19  ;;  %v500_v1 = vld [vmem:[#allocation2 + $0x18] sm:$0xff]  ;;  %v512_v12 = vld [vmem:[#allocation2 + $0x28] sm:$0xff] }
  0x78   : > { %v508_v11 = vld [vmem:[#allocation2 + $0x38] sm:$0xff] }
  0x7a   : > { %644 = vmatpush.bf16.msra.mxu0 %v1379_v20  ;;  %1439 = vmatpush.bf16.msra.mxu1 %v1379_v20 }
  0x7b   : > { %1440 = vmatpush.bf16.msra.mxu2 %v1379_v20  ;;  %1441 = vmatpush.bf16.msra.mxu3 %v1379_v20 }
  0x7e   : > { %645 = vmatpush.bf16.msra.mxu0 %v1378_v21  ;;  %1442 = vmatpush.bf16.msra.mxu1 %v1378_v21 }
  0x7f   : > { %1443 = vmatpush.bf16.msra.mxu2 %v1378_v21  ;;  %1444 = vmatpush.bf16.msra.mxu3 %v1378_v21 }
  0x82   : > { %646 = vmatpush.bf16.msra.mxu0 %v1377_v22  ;;  %1445 = vmatpush.bf16.msra.mxu1 %v1377_v22 }
  0x83   : > { %1446 = vmatpush.bf16.msra.mxu2 %v1377_v22  ;;  %1447 = vmatpush.bf16.msra.mxu3 %v1377_v22 }
  0x86   : > { %647 = vmatpush.bf16.msra.mxu0 %v1376_v23  ;;  %1448 = vmatpush.bf16.msra.mxu1 %v1376_v23 }
  0x87   : > { %1449 = vmatpush.bf16.msra.mxu2 %v1376_v23  ;;  %1450 = vmatpush.bf16.msra.mxu3 %v1376_v23 }
  0x8a   : > { %648 = vmatpush.bf16.msra.mxu0 %v1375_v24  ;;  %1451 = vmatpush.bf16.msra.mxu1 %v1375_v24 }
  0x8b   : > { %1452 = vmatpush.bf16.msra.mxu2 %v1375_v24  ;;  %1453 = vmatpush.bf16.msra.mxu3 %v1375_v24 }
  0x8d   : > { %649 = vmatmul.bf16.vlgmr.msra.gmra.mxu0 %v1367_v25  ;;  %659 = vmatmul.bf16.vlgmr.msra.gmra.mxu1 %v1369_v26 }
  0x8e   : > { %669 = vmatmul.bf16.vlgmr.msra.gmra.mxu2 %v1371_v27  ;;  %679 = vmatmul.bf16.vlgmr.msra.gmra.mxu3 %v1373_v28 }
  0x9d   : > { %654 = vmatmul.bf16.gmra.mxu0 %v1368_v29  ;;  %664 = vmatmul.bf16.gmra.mxu1 %v1370_v30 }
  0x9e   : > { %674 = vmatmul.bf16.gmra.mxu2 %v1372_v31  ;;  %684 = vmatmul.bf16.gmra.mxu3 %v1374_v32 }
 0x10a   : > { %v650_v35 = vpop.f32.mrf.mxu0  ;;  %v660_v36 = vpop.f32.mrf.mxu1 }
 0x10b   : > { %v690_v37 = vadd.f32 %v650_v35, %v497_v33  ;;  %v694_v38 = vadd.f32 %v660_v36, %v501_v34 }
 0x10d   : > { %706 = vst [vmem:[#allocation2 + $0x30] sm:$0xff] %v690_v37 }
 0x10e   : > { %710 = vst [vmem:[#allocation2 + $0x50] sm:$0xff] %v694_v38 }
 0x111   : > { %v670_v43 = vpop.f32.mrf.mxu2  ;;  %v680_v44 = vpop.f32.mrf.mxu3 }
 0x112   : > { %v698_v45 = vadd.f32 %v670_v43, %v505_v39  ;;  %v702_v46 = vadd.f32 %v680_v44, %v509_v40  ;;  %v652_v47 = vpop.f32.mrf.mxu0  ;;  %v662_v48 = vpop.f32.mrf.mxu1 }
 0x113   : > { %v691_v49 = vadd.f32 %v652_v47, %v498_v41  ;;  %v695_v50 = vadd.f32 %v662_v48, %v502_v42 }
 0x114   : > { %714 = vst [vmem:[#allocation2 + $0x40] sm:$0xff] %v698_v45 }
 0x115   : > { %718 = vst [vmem:[#allocation2 + $0x60] sm:$0xff] %v702_v46 }
 0x116   : > { %707 = vst [vmem:[#allocation2] sm:$0xff] %v691_v49 }
 0x117   : > { %711 = vst [vmem:[#allocation2 + $0x68] sm:$0xff] %v695_v50 }
 0x119   : > { %v672_v55 = vpop.f32.mrf.mxu2  ;;  %v682_v56 = vpop.f32.mrf.mxu3 }
 0x11a   : > { %v699_v57 = vadd.f32 %v672_v55, %v506_v51  ;;  %v703_v58 = vadd.f32 %v682_v56, %v510_v52  ;;  %v655_v59 = vpop.f32.mrf.mxu0  ;;  %v665_v60 = vpop.f32.mrf.mxu1 }
 0x11b   : > { %v692_v61 = vadd.f32 %v655_v59, %v499_v53  ;;  %v696_v62 = vadd.f32 %v665_v60, %v503_v54 }
 0x11c   : > { %715 = vst [vmem:[#allocation2 + $0x20] sm:$0xff] %v699_v57 }
 0x11d   : > { %719 = vst [vmem:[#allocation2 + $0x70] sm:$0xff] %v703_v58 }
 0x11e   : > { %708 = vst [vmem:[#allocation2 + $0x58] sm:$0xff] %v692_v61 }
 0x11f   : > { %712 = vst [vmem:[#allocation2 + $0x8] sm:$0xff] %v696_v62 }
 0x121   : > { %v675_v3 = vpop.f32.mrf.mxu2  ;;  %v685_v4 = vpop.f32.mrf.mxu3 }
 0x122   : > { %v700_v5 = vadd.f32 %v675_v3, %v507_v63  ;;  %v704_v6 = vadd.f32 %v685_v4, %v511_v0  ;;  %v657_v7 = vpop.f32.mrf.mxu0  ;;  %v667_v8 = vpop.f32.mrf.mxu1 }
 0x123   : > { %v693_v9 = vadd.f32 %v657_v7, %v500_v1  ;;  %v697_v10 = vadd.f32 %v667_v8, %v504_v2 }
 0x124   : > { %716 = vst [vmem:[#allocation2 + $0x10] sm:$0xff] %v700_v5 }
 0x125   : > { %720 = vst [vmem:[#allocation2 + $0x78] sm:$0xff] %v704_v6 }
 0x126   : > { %709 = vst [vmem:[#allocation2 + $0x18] sm:$0xff] %v693_v9 }
 0x127   : > { %713 = vst [vmem:[#allocation2 + $0x48] sm:$0xff] %v697_v10 }
 0x129   : > { %v677_v13 = vpop.f32.mrf.mxu2  ;;  %v687_v14 = vpop.f32.mrf.mxu3 }
 0x12a   : > { %v701_v15 = vadd.f32 %v677_v13, %v508_v11  ;;  %v705_v16 = vadd.f32 %v687_v14, %v512_v12 }
 0x12c   : > { %717 = vst [vmem:[#allocation2 + $0x38] sm:$0xff] %v701_v15 }
 0x12d   : > { %721 = vst [vmem:[#allocation2 + $0x28] sm:$0xff] %v705_v16 }
 0x12e PF: > { %p1363_p0 = scmp.ne.s32.totalorder %s1612_s11, 1 }
 0x130   : > { %725 = sbr.rel (%p1363_p0) target bundleno = 636 (0x27c), region = 93 }
 0x135   : > { %v730_v17 = vld [vmem:[#allocation2 + $0x50] sm:$0xff]  ;;  %v1513_v18 = vld [vmem:[%s2171_s4] ss:$0 sm:$0xff]  ;;  %v728_v19 = vld [vmem:[#allocation2 + $0x58] sm:$0xff]  ;;  %v826_v50 = vlaneseq }
 0x136   : > { %v726_v20 = vld [vmem:[#allocation2 + $0x30] sm:$0xff]  ;;  %v1802_v21 = vadd.f32 %v1513_v18, %v730_v17  ;;  %v748_v22 = vadd.f32 %v1513_v18, %v728_v19  ;;  %v731_v24 = vld [vmem:[#allocation2 + $0x68] sm:$0xff]  ;;  %v729_v25 = vld [vmem:[#allocation2 + $0x18] sm:$0xff] }
 0x137   : > { %v746_v23 = vadd.f32 %v1513_v18, %v726_v20  ;;  %v727_v26 = vld [vmem:[#allocation2] sm:$0xff]  ;;  %v751_v27 = vadd.f32 %v1513_v18, %v731_v24  ;;  %v749_v28 = vadd.f32 %v1513_v18, %v729_v25  ;;  %v733_v31 = vld [vmem:[#allocation2 + $0x48] sm:$0xff]  ;;  %v737_v36 = vld [vmem:[#allocation2 + $0x38] sm:$0xff]  ;;  %v1835_v53 = vand.u32 127, %v826_v50 }
 0x138   : > { %770 = vadd.xlane.f32.xlu2 %v1802_v21  ;;  %766 = vadd.xlane.f32.xlu1 %v748_v22  ;;  %v747_v29 = vadd.f32 %v1513_v18, %v727_v26  ;;  %v734_v30 = vld [vmem:[#allocation2 + $0x40] sm:$0xff]  ;;  %v732_v32 = vld [vmem:[#allocation2 + $0x8] sm:$0xff]  ;;  %v1807_v34 = vadd.f32 %v1513_v18, %v733_v31  ;;  %v736_v37 = vld [vmem:[#allocation2 + $0x10] sm:$0xff]  ;;  %v1814_v39 = vadd.f32 %v1513_v18, %v737_v36 }
 0x139   : > { %762 = vadd.xlane.f32.xlu0 %v746_v23  ;;  %v1805_v33 = vadd.f32 %v1513_v18, %v734_v30  ;;  %v1809_v35 = vadd.f32 %v1513_v18, %v732_v32  ;;  %v735_v38 = vld [vmem:[#allocation2 + $0x20] sm:$0xff]  ;;  %v1816_v40 = vadd.f32 %v1513_v18, %v736_v37  ;;  %v740_v42 = vld [vmem:[#allocation2 + $0x78] sm:$0xff]  ;;  %v739_v43 = vld [vmem:[#allocation2 + $0x70] sm:$0xff]  ;;  %vm828_vm0 = vcmp.lt.s32.totalorder %v1835_v53, 32 }
 0x13a   : > { %v1818_v41 = vadd.f32 %v1513_v18, %v735_v38  ;;  %v738_v44 = vld [vmem:[#allocation2 + $0x60] sm:$0xff]  ;;  %v1823_v45 = vadd.f32 %v1513_v18, %v740_v42  ;;  %v1825_v46 = vadd.f32 %v1513_v18, %v739_v43  ;;  %v741_v48 = vld [vmem:[#allocation2 + $0x28] sm:$0xff] }
 0x13b   : > { %v1827_v47 = vadd.f32 %v1513_v18, %v738_v44  ;;  %v1832_v49 = vadd.f32 %v1513_v18, %v741_v48 }
 0x140   : > { %772 = vadd.xlane.f32.xlu2 %v751_v27  ;;  %768 = vadd.xlane.f32.xlu1 %v749_v28 }
 0x141   : > { %764 = vadd.xlane.f32.xlu0 %v747_v29 }
 0x148   : > { %778 = vadd.xlane.f32.xlu2 %v1805_v33  ;;  %776 = vadd.xlane.f32.xlu1 %v1807_v34 }
 0x149   : > { %774 = vadd.xlane.f32.xlu0 %v1809_v35 }
 0x150   : > { %784 = vadd.xlane.f32.xlu2 %v1814_v39  ;;  %782 = vadd.xlane.f32.xlu1 %v1816_v40 }
 0x151   : > { %780 = vadd.xlane.f32.xlu0 %v1818_v41 }
 0x158   : > { %790 = vadd.xlane.f32.xlu2 %v1823_v45  ;;  %788 = vadd.xlane.f32.xlu1 %v1825_v46 }
 0x159   : > { %786 = vadd.xlane.f32.xlu0 %v1827_v47 }
 0x161   : > { %792 = vadd.xlane.f32.xlu0 %v1832_v49 }
 0x1ab   : > { %v771_v51 = vpop.xlane.xlu2 %770  ;;  %v767_v52 = vpop.xlane.xlu1 %766 }
 0x1ac   : > { %v796_v54 = vmul.f32 0.03125, %v767_v52  ;;  %v763_v55 = vpop.xlane.xlu0 %762  ;;  %v798_v7 = vmul.f32 0.03125, %v771_v51 }
 0x1ad   : > { %v794_v56 = vmul.f32 0.03125, %v763_v55 }
 0x1ae   : > { %v1837_v57 = vsub.f32 %v748_v22, %v796_v54  ;;  %v1867_v14 = vsub.f32 %v1802_v21, %v798_v7 }
 0x1af   : > { %v1839_v58 = vsub.f32 %v746_v23, %v794_v56 }
 0x1b0   : > { %v831_v59 = vmul.f32 %v1837_v57, %v1837_v57  ;;  %v833_v21 = vmul.f32 %v1867_v14, %v1867_v14 }
 0x1b1   : > { %v829_v60 = vmul.f32 %v1839_v58, %v1839_v58 }
 0x1b2   : > { %v847_v61 = vsel %vm828_vm0, %v831_v59, 0.0  ;;  %v849_v30 = vsel %vm828_vm0, %v833_v21, 0.0 }
 0x1b3   : > { %v773_v62 = vpop.xlane.xlu2 %772  ;;  %v769_v63 = vpop.xlane.xlu1 %768  ;;  %865 = vadd.xlane.f32.xlu0 %v847_v61  ;;  %v845_v0 = vsel %vm828_vm0, %v829_v60, 0.0 }
 0x1b4   : > { %v799_v1 = vmul.f32 0.03125, %v773_v62  ;;  %v797_v2 = vmul.f32 0.03125, %v769_v63  ;;  %861 = vadd.xlane.f32.xlu1 %v845_v0  ;;  %v765_v3 = vpop.xlane.xlu0 %764 }
 0x1b5   : > { %v795_v4 = vmul.f32 0.03125, %v765_v3 }
 0x1b6   : > { %v1850_v5 = vsub.f32 %v751_v27, %v799_v1  ;;  %v1852_v6 = vsub.f32 %v749_v28, %v797_v2 }
 0x1b7   : > { %v1854_v8 = vsub.f32 %v747_v29, %v795_v4 }
 0x1b8   : > { %v834_v9 = vmul.f32 %v1850_v5, %v1850_v5  ;;  %v832_v10 = vmul.f32 %v1852_v6, %v1852_v6 }
 0x1b9   : > { %v830_v11 = vmul.f32 %v1854_v8, %v1854_v8 }
 0x1ba   : > { %v850_v12 = vsel %vm828_vm0, %v834_v9, 0.0  ;;  %v848_v13 = vsel %vm828_vm0, %v832_v10, 0.0 }
 0x1bb   : > { %v779_v15 = vpop.xlane.xlu2 %778  ;;  %871 = vadd.xlane.f32.xlu0 %v850_v12  ;;  %v846_v16 = vsel %vm828_vm0, %v830_v11, 0.0  ;;  %v777_v17 = vpop.xlane.xlu1 %776 }
 0x1bc   : > { %v802_v18 = vmul.f32 0.03125, %v779_v15  ;;  %867 = vadd.xlane.f32.xlu1 %v848_v13  ;;  %863 = vadd.xlane.f32.xlu2 %v846_v16  ;;  %v775_v19 = vpop.xlane.xlu0 %774  ;;  %v801_v22 = vmul.f32 0.03125, %v777_v17 }
 0x1bd   : > { %v800_v20 = vmul.f32 0.03125, %v775_v19 }
 0x1be   : > { %v1872_v23 = vsub.f32 %v1805_v33, %v802_v18  ;;  %v1882_v26 = vsub.f32 %v1807_v34, %v801_v22 }
 0x1bf   : > { %v1875_v24 = vsub.f32 %v1809_v35, %v800_v20 }
 0x1c0   : > { %v837_v25 = vmul.f32 %v1872_v23, %v1872_v23  ;;  %v836_v37 = vmul.f32 %v1882_v26, %v1882_v26 }
 0x1c1   : > { %v835_v27 = vmul.f32 %v1875_v24, %v1875_v24 }
 0x1c2   : > { %v853_v28 = vsel %vm828_vm0, %v837_v25, 0.0  ;;  %v852_v48 = vsel %vm828_vm0, %v836_v37, 0.0 }
 0x1c3   : > { %v785_v29 = vpop.xlane.xlu2 %784  ;;  %877 = vadd.xlane.f32.xlu0 %v853_v28  ;;  %v851_v31 = vsel %vm828_vm0, %v835_v27, 0.0  ;;  %v783_v32 = vpop.xlane.xlu1 %782 }
 0x1c4   : > { %v805_v33 = vmul.f32 0.03125, %v785_v29  ;;  %869 = vadd.xlane.f32.xlu2 %v849_v30  ;;  %873 = vadd.xlane.f32.xlu1 %v851_v31  ;;  %v781_v34 = vpop.xlane.xlu0 %780  ;;  %v804_v36 = vmul.f32 0.03125, %v783_v32 }
 0x1c5   : > { %v803_v35 = vmul.f32 0.03125, %v781_v34 }
 0x1c6   : > { %v1895_v38 = vsub.f32 %v1814_v39, %v805_v33  ;;  %v1903_v44 = vsub.f32 %v1816_v40, %v804_v36 }
 0x1c7   : > { %v1898_v42 = vsub.f32 %v1818_v41, %v803_v35 }
 0x1c8   : > { %v840_v43 = vmul.f32 %v1895_v38, %v1895_v38  ;;  %v839_v59 = vmul.f32 %v1903_v44, %v1903_v44 }
 0x1c9   : > { %v838_v50 = vmul.f32 %v1898_v42, %v1898_v42 }
 0x1ca   : > { %v856_v51 = vsel %vm828_vm0, %v840_v43, 0.0  ;;  %v855_v0 = vsel %vm828_vm0, %v839_v59, 0.0 }
 0x1cb   : > { %v791_v39 = vpop.xlane.xlu2 %790  ;;  %883 = vadd.xlane.f32.xlu0 %v856_v51  ;;  %v854_v41 = vsel %vm828_vm0, %v838_v50, 0.0  ;;  %v789_v52 = vpop.xlane.xlu1 %788 }
 0x1cc   : > { %v808_v54 = vmul.f32 0.03125, %v791_v39  ;;  %875 = vadd.xlane.f32.xlu2 %v852_v48  ;;  %879 = vadd.xlane.f32.xlu1 %v854_v41  ;;  %v787_v40 = vpop.xlane.xlu0 %786  ;;  %v807_v56 = vmul.f32 0.03125, %v789_v52 }
 0x1cd   : > { %v806_v55 = vmul.f32 0.03125, %v787_v40 }
 0x1ce   : > { %v1916_v60 = vsub.f32 %v1823_v45, %v808_v54  ;;  %v1924_v63 = vsub.f32 %v1825_v46, %v807_v56 }
 0x1cf   : > { %v1919_v61 = vsub.f32 %v1827_v47, %v806_v55 }
 0x1d0   : > { %v843_v62 = vmul.f32 %v1916_v60, %v1916_v60  ;;  %v842_v46 = vmul.f32 %v1924_v63, %v1924_v63 }
 0x1d1   : > { %v841_v1 = vmul.f32 %v1919_v61, %v1919_v61 }
 0x1d2   : > { %v859_v2 = vsel %vm828_vm0, %v843_v62, 0.0  ;;  %v858_v7 = vsel %vm828_vm0, %v842_v46, 0.0  ;;  %v1967_v62 = vld [vmem:[%s2172_s5] ss:$0 sm:$0xff] }
 0x1d3   : > { %889 = vadd.xlane.f32.xlu0 %v859_v2  ;;  %v857_v45 = vsel %vm828_vm0, %v841_v1, 0.0 }
 0x1d4   : > { %881 = vadd.xlane.f32.xlu2 %v855_v0  ;;  %885 = vadd.xlane.f32.xlu1 %v857_v45  ;;  %v793_v47 = vpop.xlane.xlu0 %792 }
 0x1d5   : > { %v809_v3 = vmul.f32 0.03125, %v793_v47 }
 0x1d7   : > { %v1937_v4 = vsub.f32 %v1832_v49, %v809_v3 }
 0x1d9   : > { %v844_v9 = vmul.f32 %v1937_v4, %v1937_v4 }
 0x1db   : > { %v860_v10 = vsel %vm828_vm0, %v844_v9, 0.0 }
 0x1dc   : > { %887 = vadd.xlane.f32.xlu2 %v858_v7  ;;  %891 = vadd.xlane.f32.xlu1 %v860_v10 }
 0x226   : > { %v866_v11 = vpop.xlane.xlu0 %865 }
 0x227   : > { %v862_v12 = vpop.xlane.xlu1 %861  ;;  %v895_v13 = vmul.f32 0.03125, %v866_v11 }
 0x228   : > { %v893_v15 = vmul.f32 0.03125, %v862_v12 }
 0x229   : > { %v911_v16 = vadd.f32 1e-05, %v895_v13 }
 0x22a   : > { %v909_v17 = vadd.f32 1e-05, %v893_v15  ;;  %v1988_v15 = vld [vmem:[%s2173_s6] ss:$0 sm:$0xff] }
 0x22b   : > { %1516 = vrsqrt.f32 %v911_v16  ;;  %vm951_vm3 = vweird.f32 %v911_v16 }
 0x22c   : > { %1518 = vrsqrt.f32 %v909_v17  ;;  %vm931_vm4 = vweird.f32 %v909_v17 }
 0x22e   : > { %v872_v49 = vpop.xlane.xlu0 %871 }
 0x22f   : > { %v868_v18 = vpop.xlane.xlu1 %867  ;;  %v864_v19 = vpop.xlane.xlu2 %863  ;;  %v898_v20 = vmul.f32 0.03125, %v872_v49 }
 0x230   : > { %v896_v22 = vmul.f32 0.03125, %v868_v18  ;;  %v894_v21 = vmul.f32 0.03125, %v864_v19 }
 0x231   : > { %v1517_v25 = vpop.eup %1516  ;;  %v1945_v27 = vadd.f32 1e-05, %v898_v20 }
 0x232   : > { %v1519_v53 = vpop.eup %1518  ;;  %v946_v28 = vmul.f32 %v1517_v25, %v911_v16  ;;  %v1947_v29 = vadd.f32 1e-05, %v896_v22  ;;  %v1949_v30 = vadd.f32 1e-05, %v894_v21  ;;  %vm952_vm1 = vweird.f32 %v1517_v25 }
 0x233   : > { %v926_v31 = vmul.f32 %v1519_v53, %v909_v17  ;;  %1520 = vrsqrt.f32 %v1945_v27  ;;  %vm932_vm2 = vweird.f32 %v1519_v53  ;;  %vm953_vm5 = vmor %vm951_vm3, %vm952_vm1  ;;  %vm981_vm7 = vweird.f32 %v1945_v27 }
 0x234   : > { %v947_v32 = vmul.f32 %v1517_v25, %v946_v28  ;;  %1522 = vrsqrt.f32 %v1947_v29  ;;  %vm933_vm6 = vmor %vm931_vm4, %vm932_vm2  ;;  %vm961_vm10 = vweird.f32 %v1947_v29  ;;  %vm941_vm12 = vweird.f32 %v1949_v30 }
 0x235   : > { %v927_v33 = vmul.f32 %v1519_v53, %v926_v31  ;;  %1524 = vrsqrt.f32 %v1949_v30 }
 0x236   : > { %v948_v34 = vmul.f32 0.5, %v947_v32  ;;  %v878_v35 = vpop.xlane.xlu0 %877 }
 0x237   : > { %v928_v36 = vmul.f32 0.5, %v927_v33  ;;  %v870_v37 = vpop.xlane.xlu2 %869  ;;  %v874_v43 = vpop.xlane.xlu1 %873  ;;  %v901_v39 = vmul.f32 0.03125, %v878_v35 }
 0x238   : > { %v949_v48 = vsub.f32 1.5, %v948_v34  ;;  %v897_v50 = vmul.f32 0.03125, %v870_v37  ;;  %v899_v51 = vmul.f32 0.03125, %v874_v43 }
 0x239   : > { %v1954_v41 = vpop.eup %1520  ;;  %v929_v52 = vsub.f32 1.5, %v928_v36  ;;  %v1977_v46 = vadd.f32 1e-05, %v901_v39 }
 0x23a   : > { %v1956_v54 = vpop.eup %1522  ;;  %v950_v40 = vmul.f32 %v1517_v25, %v949_v48  ;;  %v976_v55 = vmul.f32 %v1954_v41, %v1945_v27  ;;  %v1960_v56 = vadd.f32 1e-05, %v897_v50  ;;  %v1972_v2 = vadd.f32 1e-05, %v899_v51 }
 0x23b   : > { %v1962_v59 = vpop.eup %1524  ;;  %v930_v0 = vmul.f32 %v1519_v53, %v929_v52  ;;  %v956_v1 = vmul.f32 %v1956_v54, %v1947_v29  ;;  %vm982_vm8 = vweird.f32 %v1954_v41  ;;  %vm962_vm9 = vweird.f32 %v1956_v54 }
 0x23c   : > { %v954_v45 = vsel %vm953_vm5, %v1517_v25, %v950_v40  ;;  %v936_v47 = vmul.f32 %v1962_v59, %v1949_v30  ;;  %v977_v3 = vmul.f32 %v1954_v41, %v976_v55  ;;  %1526 = vrsqrt.f32 %v1960_v56  ;;  %vm2006_vm13 = vmor %vm981_vm7, %vm982_vm8 }
 0x23d   : > { %v934_v7 = vsel %vm933_vm6, %v1519_v53, %v930_v0  ;;  %v1087_v9 = vmul.f32 %v954_v45, %v1837_v57  ;;  %v957_v10 = vmul.f32 %v1956_v54, %v956_v1  ;;  %1528 = vrsqrt.f32 %v1972_v2  ;;  %vm963_vm14 = vmor %vm961_vm10, %vm962_vm9 }
 0x23e   : > { %v1085_v11 = vmul.f32 %v934_v7, %v1839_v58  ;;  %v937_v12 = vmul.f32 %v1962_v59, %v936_v47  ;;  %v978_v13 = vmul.f32 0.5, %v977_v3  ;;  %1530 = vrsqrt.f32 %v1977_v46  ;;  %v884_v30 = vpop.xlane.xlu0 %883 }
 0x23f   : > { %v1107_v16 = vmul.f32 %v1967_v62, %v1087_v9  ;;  %v958_v17 = vmul.f32 0.5, %v957_v10  ;;  %v876_v57 = vpop.xlane.xlu2 %875  ;;  %vm942_vm11 = vweird.f32 %v1962_v59  ;;  %v880_v25 = vpop.xlane.xlu1 %879  ;;  %vm971_vm15 = vweird.f32 %v1960_v56 }
 0x240   : > { %v1105_v58 = vmul.f32 %v1967_v62, %v1085_v11  ;;  %v938_v49 = vmul.f32 0.5, %v937_v12  ;;  %v979_v18 = vsub.f32 1.5, %v978_v13  ;;  %v900_v20 = vmul.f32 0.03125, %v876_v57  ;;  %vm943_vm0 = vmor %vm941_vm12, %vm942_vm11 }
 0x241   : > { %v959_v19 = vsub.f32 1.5, %v958_v17  ;;  %v1127_v28 = vadd.f32 %v1988_v15, %v1107_v16  ;;  %v902_v43 = vmul.f32 0.03125, %v880_v25  ;;  %vm991_vm1 = vweird.f32 %v1972_v2 }
 0x242   : > { %v939_v22 = vsub.f32 1.5, %v938_v49  ;;  %v980_v21 = vmul.f32 %v1954_v41, %v979_v18  ;;  %v1527_v53 = vpop.eup %1526  ;;  %v2010_v29 = vadd.f32 1e-05, %v900_v20  ;;  %v1125_v33 = vadd.f32 %v1988_v15, %v1105_v58 }
 0x243   : > { %v960_v31 = vmul.f32 %v1956_v54, %v959_v19  ;;  %v966_v35 = vmul.f32 %v1527_v53, %v1960_v56  ;;  %v1529_v36 = vpop.eup %1528  ;;  %v904_v55 = vmul.f32 0.03125, %v884_v30  ;;  %vm972_vm2 = vweird.f32 %v1527_v53 }
 0x244   : > { %v940_v34 = vmul.f32 %v1962_v59, %v939_v22  ;;  %v984_v27 = vsel %vm2006_vm13, %v1954_v41, %v980_v21  ;;  %1532 = vrsqrt.f32 %v2010_v29  ;;  %v2023_v48 = vpop.eup %1530  ;;  %v986_v52 = vmul.f32 %v1529_v36, %v1972_v2  ;;  %vm973_vm4 = vmor %vm971_vm15, %vm972_vm2 }
 0x245   : > { %v964_v37 = vsel %vm963_vm14, %v1956_v54, %v960_v31  ;;  %v967_v39 = vmul.f32 %v1527_v53, %v966_v35  ;;  %v1143_v54 = vmax.f32 %v1127_v28, 0.0  ;;  %v1006_v41 = vmul.f32 %v2023_v48, %v1977_v46 }
 0x246   : > { %v1088_v50 = vmul.f32 %v964_v37, %v1852_v6  ;;  %v944_v51 = vsel %vm943_vm0, %v1962_v59, %v940_v34  ;;  %v1141_v0 = vmax.f32 %v1125_v33, 0.0  ;;  %v987_v47 = vmul.f32 %v1529_v36, %v986_v52 }
 0x247   : > { %v1086_v40 = vmul.f32 %v944_v51, %v1854_v8  ;;  %v968_v45 = vmul.f32 0.5, %v967_v39  ;;  %v1090_v59 = vmul.f32 %v984_v27, %v1850_v5  ;;  %v1007_v3 = vmul.f32 %v2023_v48, %v1006_v41  ;;  %v882_v7 = vpop.xlane.xlu2 %881  ;;  %v886_v22 = vpop.xlane.xlu1 %885 }
 0x248   : > { %v1108_v1 = vmul.f32 %v1967_v62, %v1088_v50  ;;  %v988_v10 = vmul.f32 0.5, %v987_v47  ;;  %v2037_v11 = vadd.f32 1e-05, %v902_v43  ;;  %vm992_vm3 = vweird.f32 %v1529_v36  ;;  %v890_v43 = vpop.xlane.xlu0 %889 }
 0x249   : > { %v1106_v6 = vmul.f32 %v1967_v62, %v1086_v40  ;;  %v969_v8 = vsub.f32 1.5, %v968_v45  ;;  %v1008_v16 = vmul.f32 0.5, %v1007_v3  ;;  %v2040_v17 = vadd.f32 1e-05, %v904_v55  ;;  %vm993_vm5 = vmor %vm991_vm1, %vm992_vm3 }
 0x24a   : > { %v1128_v9 = vadd.f32 %v1988_v15, %v1108_v1  ;;  %v1533_v12 = vpop.eup %1532  ;;  %v989_v5 = vsub.f32 1.5, %v988_v10  ;;  %v1110_v19 = vmul.f32 %v1967_v62, %v1090_v59  ;;  %1534 = vrsqrt.f32 %v2037_v11 }
 0x24b   : > { %v1126_v13 = vadd.f32 %v1988_v15, %v1106_v6  ;;  %v970_v58 = vmul.f32 %v1527_v53, %v969_v8  ;;  %v996_v49 = vmul.f32 %v1533_v12, %v2010_v29  ;;  %v1009_v20 = vsub.f32 1.5, %v1008_v16 }
 0x24c   : > { %v1144_v57 = vmax.f32 %v1128_v9, 0.0  ;;  %v990_v28 = vmul.f32 %v1529_v36, %v989_v5  ;;  %vm1011_vm6 = vweird.f32 %v1977_v46  ;;  %vm1012_vm7 = vweird.f32 %v2023_v48 }
 0x24d   : > { %v1142_v18 = vmax.f32 %v1126_v13, 0.0  ;;  %v974_v25 = vsel %vm973_vm4, %v1527_v53, %v970_v58  ;;  %v997_v31 = vmul.f32 %v1533_v12, %v996_v49  ;;  %v1010_v34 = vmul.f32 %v2023_v48, %v1009_v20  ;;  %vm2066_vm9 = vmor %vm1011_vm6, %vm1012_vm7 }
 0x24e   : > { %v1391_v21 = vpack.c.bf16 %v1144_v57, %v1143_v54  ;;  %v1089_v33 = vmul.f32 %v974_v25, %v1867_v14  ;;  %v994_v56 = vsel %vm993_vm5, %v1529_v36, %v990_v28  ;;  %1536 = vrsqrt.f32 %v2040_v17 }
 0x24f   : > { %v1386_v32 = vpack.c.bf16 %v1142_v18, %v1141_v0  ;;  %v998_v35 = vmul.f32 0.5, %v997_v31  ;;  %v1130_v53 = vadd.f32 %v1988_v15, %v1110_v19  ;;  %v1091_v30 = vmul.f32 %v994_v56, %v1875_v24  ;;  %v888_v24 = vpop.xlane.xlu2 %887  ;;  %v892_v9 = vpop.xlane.xlu1 %891 }
 0x250   : > { %1423 = vst [vmem:[%s1770_s26 + $0x8] sm:$0xff] %v1391_v21   ;;  %v1109_v14 = vmul.f32 %v1967_v62, %v1089_v33  ;;  %v903_v2 = vmul.f32 0.03125, %v882_v7  ;;  %vm1002_vm8 = vweird.f32 %v1533_v12  ;;  %v905_v27 = vmul.f32 0.03125, %v886_v22  ;;  %v1535_v50 = vpop.eup %1534 }
 0x251   : > { %1387 = vst [vmem:[%s1770_s26] sm:$0xff] %v1386_v32   ;;  %v999_v37 = vsub.f32 1.5, %v998_v35  ;;  %vm1001_vm10 = vweird.f32 %v2010_v29  ;;  %v1111_v52 = vmul.f32 %v1967_v62, %v1091_v30  ;;  %v1014_v54 = vsel %vm2066_vm9, %v2023_v48, %v1010_v34 }
 0x252   : > { %v1129_v36 = vadd.f32 %v1988_v15, %v1109_v14  ;;  %v2071_v39 = vadd.f32 1e-05, %v903_v2  ;;  %v1016_v41 = vmul.f32 %v1535_v50, %v2037_v11  ;;  %v1146_v55 = vmax.f32 %v1130_v53, 0.0  ;;  %vm1003_vm11 = vmor %vm1001_vm10, %vm1002_vm8 }
 0x253   : > { %v1000_v40 = vmul.f32 %v1533_v12, %v999_v37  ;;  %v907_v29 = vmul.f32 0.03125, %v890_v43  ;;  %v2080_v47 = vadd.f32 1e-05, %v905_v27  ;;  %v906_v6 = vmul.f32 0.03125, %v888_v24 }
 0x254   : > { %v1145_v46 = vmax.f32 %v1129_v36, 0.0  ;;  %1538 = vrsqrt.f32 %v2071_v39  ;;  %v1537_v0 = vpop.eup %1536  ;;  %v1017_v45 = vmul.f32 %v1535_v50, %v1016_v41  ;;  %v1093_v48 = vmul.f32 %v1014_v54, %v1872_v23 }
 0x255   : > { %v1004_v1 = vsel %vm1003_vm11, %v1533_v12, %v1000_v40  ;;  %v1036_v7 = vmul.f32 %v1537_v0, %v2040_v17  ;;  %v1131_v8 = vadd.f32 %v1988_v15, %v1111_v52  ;;  %vm1021_vm12 = vweird.f32 %v2037_v11 }
 0x256   : > { %v1396_v59 = vpack.c.bf16 %v1146_v55, %v1145_v46  ;;  %v1092_v3 = vmul.f32 %v1004_v1, %v1882_v26  ;;  %v1018_v10 = vmul.f32 0.5, %v1017_v45  ;;  %1540 = vrsqrt.f32 %v2080_v47 }
 0x257   : > { %v1037_v13 = vmul.f32 %v1537_v0, %v1036_v7  ;;  %vm1041_vm13 = vweird.f32 %v2040_v17  ;;  %v2091_v16 = vadd.f32 1e-05, %v907_v29  ;;  %vm1022_vm14 = vweird.f32 %v1535_v50 }
 0x258   : > { %1424 = vst [vmem:[%s1770_s26 + $0x10] sm:$0xff] %v1396_v59   ;;  %v1112_v12 = vmul.f32 %v1967_v62, %v1092_v3  ;;  %v1019_v23 = vsub.f32 1.5, %v1018_v10  ;;  %v2093_v26 = vadd.f32 1e-05, %v906_v6  ;;  %v908_v57 = vmul.f32 0.03125, %v892_v9  ;;  %vm1023_vm15 = vmor %vm1021_vm12, %vm1022_vm14 }
 0x259   : > { %v1113_v5 = vmul.f32 %v1967_v62, %v1093_v48  ;;  %v1038_v18 = vmul.f32 0.5, %v1037_v13  ;;  %1542 = vrsqrt.f32 %v2091_v16  ;;  %v1147_v19 = vmax.f32 %v1131_v8, 0.0 }
 0x25a   : > { %v1539_v58 = vpop.eup %1538  ;;  %v1132_v49 = vadd.f32 %v1988_v15, %v1112_v12  ;;  %v1020_v20 = vmul.f32 %v1535_v50, %v1019_v23  ;;  %1544 = vrsqrt.f32 %v2093_v26  ;;  %vm1042_vm0 = vweird.f32 %v1537_v0 }
 0x25b   : > { %v1026_v22 = vmul.f32 %v1539_v58, %v2071_v39  ;;  %v1039_v25 = vsub.f32 1.5, %v1038_v18  ;;  %v2102_v28 = vadd.f32 1e-05, %v908_v57  ;;  %v1133_v14 = vadd.f32 %v1988_v15, %v1113_v5  ;;  %vm1043_vm1 = vmor %vm1041_vm13, %vm1042_vm0 }
 0x25c   : > { %v1148_v21 = vmax.f32 %v1132_v49, 0.0  ;;  %v1541_v31 = vpop.eup %1540  ;;  %v1024_v32 = vsel %vm1023_vm15, %v1535_v50, %v1020_v20  ;;  %vm1032_vm2 = vweird.f32 %v1539_v58  ;;  %vm1031_vm3 = vweird.f32 %v2071_v39 }
 0x25d   : > { %v1027_v33 = vmul.f32 %v1539_v58, %v1026_v22  ;;  %v1094_v34 = vmul.f32 %v1024_v32, %v1898_v42  ;;  %v1040_v35 = vmul.f32 %v1537_v0, %v1039_v25  ;;  %v1046_v53 = vmul.f32 %v1541_v31, %v2080_v47  ;;  %vm1033_vm5 = vmor %vm1031_vm3, %vm1032_vm2 }
 0x25e   : > { %v1401_v56 = vpack.c.bf16 %v1148_v21, %v1147_v19  ;;  %1546 = vrsqrt.f32 %v2102_v28  ;;  %v1149_v52 = vmax.f32 %v1133_v14, 0.0  ;;  %vm1052_vm4 = vweird.f32 %v1541_v31 }
 0x25f   : > { %v1028_v11 = vmul.f32 0.5, %v1027_v33  ;;  %v1543_v30 = vpop.eup %1542  ;;  %v1114_v2 = vmul.f32 %v1967_v62, %v1094_v34  ;;  %v1044_v37 = vsel %vm1043_vm1, %v1537_v0, %v1040_v35  ;;  %v1047_v27 = vmul.f32 %v1541_v31, %v1046_v53 }
 0x260   : > { %1425 = vst [vmem:[%s1770_s26 + $0x18] sm:$0xff] %v1401_v56   ;;  %v1545_v43 = vpop.eup %1544  ;;  %v1096_v42 = vmul.f32 %v1044_v37, %v1895_v38  ;;  %v1066_v36 = vmul.f32 %v1543_v30, %v2091_v16  ;;  %vm1051_vm6 = vweird.f32 %v2080_v47  ;;  %vm1071_vm7 = vweird.f32 %v2091_v16 }
 0x261   : > { %v1029_v50 = vsub.f32 1.5, %v1028_v11  ;;  %v1134_v51 = vadd.f32 %v1988_v15, %v1114_v2  ;;  %v1048_v17 = vmul.f32 0.5, %v1047_v27  ;;  %v1056_v24 = vmul.f32 %v1545_v43, %v2093_v26  ;;  %vm1053_vm8 = vmor %vm1051_vm6, %vm1052_vm4 }
 0x262   : > { %v1067_v40 = vmul.f32 %v1543_v30, %v1066_v36  ;;  %v1116_v55 = vmul.f32 %v1967_v62, %v1096_v42  ;;  %vm1072_vm9 = vweird.f32 %v1543_v30  ;;  %vm1062_vm10 = vweird.f32 %v1545_v43 }
 0x263   : > { %v1030_v54 = vmul.f32 %v1539_v58, %v1029_v50  ;;  %v1150_v41 = vmax.f32 %v1134_v51, 0.0  ;;  %v1049_v38 = vsub.f32 1.5, %v1048_v17  ;;  %v1057_v46 = vmul.f32 %v1545_v43, %v1056_v24  ;;  %vm1073_vm11 = vmor %vm1071_vm7, %vm1072_vm9 }
 0x264   : > { %v1547_v29 = vpop.eup %1546  ;;  %v1068_v1 = vmul.f32 0.5, %v1067_v40  ;;  %v1136_v7 = vadd.f32 %v1988_v15, %v1116_v55  ;;  %vm1061_vm12 = vweird.f32 %v2093_v26  ;;  %vm1081_vm15 = vweird.f32 %v2102_v28 }
 0x265   : > { %v1034_v0 = vsel %vm1033_vm5, %v1539_v58, %v1030_v54  ;;  %v1406_v39 = vpack.c.bf16 %v1150_v41, %v1149_v52  ;;  %v1050_v6 = vmul.f32 %v1541_v31, %v1049_v38  ;;  %v1058_v59 = vmul.f32 0.5, %v1057_v46  ;;  %vm1063_vm13 = vmor %vm1061_vm12, %vm1062_vm10 }
 0x266   : > { %v1095_v45 = vmul.f32 %v1034_v0, %v1903_v44  ;;  %v1069_v48 = vsub.f32 1.5, %v1068_v1  ;;  %v1076_v3 = vmul.f32 %v1547_v29, %v2102_v28  ;;  %v1152_v49 = vmax.f32 %v1136_v7, 0.0 }
 0x267   : > { %1426 = vst [vmem:[%s1770_s26 + $0x20] sm:$0xff] %v1406_v39   ;;  %v1054_v9 = vsel %vm1053_vm8, %v1541_v31, %v1050_v6  ;;  %v1059_v8 = vsub.f32 1.5, %v1058_v59  ;;  %vm1082_vm14 = vweird.f32 %v1547_v29 }
 0x268   : > { %v1115_v47 = vmul.f32 %v1967_v62, %v1095_v45  ;;  %v1097_v10 = vmul.f32 %v1054_v9, %v1919_v61  ;;  %v1070_v12 = vmul.f32 %v1543_v30, %v1069_v48  ;;  %v1077_v44 = vmul.f32 %v1547_v29, %v1076_v3  ;;  %vm1083_vm0 = vmor %vm1081_vm15, %vm1082_vm14 }
 0x269   : > { %v1060_v23 = vmul.f32 %v1545_v43, %v1059_v8 }
 0x26a   : > { %v1135_v13 = vadd.f32 %v1988_v15, %v1115_v47  ;;  %v1117_v57 = vmul.f32 %v1967_v62, %v1097_v10  ;;  %v1074_v58 = vsel %vm1073_vm11, %v1543_v30, %v1070_v12  ;;  %v1078_v5 = vmul.f32 0.5, %v1077_v44 }
 0x26b   : > { %v1099_v61 = vmul.f32 %v1074_v58, %v1916_v60  ;;  %v1064_v19 = vsel %vm1063_vm13, %v1545_v43, %v1060_v23 }
 0x26c   : > { %v1151_v18 = vmax.f32 %v1135_v13, 0.0  ;;  %v1098_v20 = vmul.f32 %v1064_v19, %v1924_v63  ;;  %v1079_v22 = vsub.f32 1.5, %v1078_v5  ;;  %v1137_v21 = vadd.f32 %v1988_v15, %v1117_v57 }
 0x26d   : > { %v1119_v31 = vmul.f32 %v1967_v62, %v1099_v61 }
 0x26e   : > { %v1411_v16 = vpack.c.bf16 %v1152_v49, %v1151_v18  ;;  %v1118_v26 = vmul.f32 %v1967_v62, %v1098_v20  ;;  %v1080_v25 = vmul.f32 %v1547_v29, %v1079_v22  ;;  %v1153_v33 = vmax.f32 %v1137_v21, 0.0 }
 0x26f   : > { %v1139_v34 = vadd.f32 %v1988_v15, %v1119_v31 }
 0x270   : > { %1427 = vst [vmem:[%s1770_s26 + $0x28] sm:$0xff] %v1411_v16   ;;  %v1138_v60 = vadd.f32 %v1988_v15, %v1118_v26  ;;  %v1084_v32 = vsel %vm1083_vm0, %v1547_v29, %v1080_v25 }
 0x271   : > { %v1100_v63 = vmul.f32 %v1084_v32, %v1937_v4  ;;  %v1155_v28 = vmax.f32 %v1139_v34, 0.0 }
 0x272   : > { %v1154_v56 = vmax.f32 %v1138_v60, 0.0 }
 0x273   : > { %v1120_v35 = vmul.f32 %v1967_v62, %v1100_v63 }
 0x274   : > { %v1416_v53 = vpack.c.bf16 %v1154_v56, %v1153_v33 }
 0x275   : > { %v1140_v14 = vadd.f32 %v1988_v15, %v1120_v35 }
 0x276   : > { %1428 = vst [vmem:[%s1770_s26 + $0x30] sm:$0xff] %v1416_v53  }
 0x277   : > { %v1156_v11 = vmax.f32 %v1140_v14, 0.0 }
 0x279   : > { %v1421_v30 = vpack.c.bf16 %v1156_v11, %v1155_v28 }
 0x27b   : > { %1429 = vst [vmem:[%s1770_s26 + $0x38] sm:$0xff] %v1421_v30  }
 0x27c PF: > { %s30_s13 = sadd.s32 1, %s1628_s13   ;;  %s2180_s9 = smov %s1608_s10 }
 0x27d   : > { %p27_p1 = scmp.ge.s32.totalorder %s30_s13, 6   ;;  %s2181_s10 = smov %s1734_s16 }
 0x27e   : > { %s2182_s11 = smov %s1620_s12  ;;  %s2183_s0 = smov %s1624_s1 }
 0x27f   : > { %s2184_s12 = smov %s2187_s14  ;;  %s2185_s1 = smov %s2191_s15 }
 0x280   :  { %29 = sbr.rel (!%p27_p1) target bundleno = 11 (0xb), region = 131 }

</bundles_post_ra>
